<compile_context>
chip_gen: v7x
topology: tpu7x:2x2x1
jax: 0.10.0
libtpu: 0.0.40
codegen_flags: <defaults>
</compile_context>

<pallas_src>
import numpy as np
import jax
import jax.numpy as jnp
from jax.experimental import pallas as pl
from jax.experimental.pallas import tpu as pltpu

IN_DIM = 16
UNIT = 8
KERNELS = (2, 2, 3, 3)
DIM = len(KERNELS) * IN_DIM - sum(KERNELS) + len(KERNELS)  # 58
BN_EPS = 1e-5
BATCH = 8
LANES = 128


def aelocal_kernel(
    x_ref,                                                    # (Bt, IN_DIM) f32
    we1_ref, be1_ref, we2_ref, be2_ref, we3_ref, be3_ref,     # encoder (conv+BN folded)
    wd1_ref, bd1_ref, wd2_ref, bd2_ref, wd3_ref, bd3_ref,     # decoder
    wbf_ref, bb_ref,                                          # bilinear (16, 16*128), (1,128)
    wo1_ref, bo1_ref, wo2_ref, bo2_ref,                       # BiNN head
    out_ref,                                                  # (Bt, 3*128) slab
):
    f32 = jnp.float32
    x = x_ref[...].astype(f32)                                # (Bt, IN_DIM)

    def dot(a, w_ref):
        # bf16 MXU operands, f32 accumulation.
        return jnp.dot(a.astype(jnp.bfloat16), w_ref[...],
                       preferred_element_type=f32)

    relu = lambda z: jnp.maximum(z, 0.0)

    # --- encoder: (Linear(+conv fold) + BN + ReLU + Dropout) x 3, eval mode ---
    h = relu(dot(x, we1_ref) + be1_ref[...])                  # (Bt, 128)
    h = relu(dot(h, we2_ref) + be2_ref[...])                  # lanes 64.. = 0
    code = relu(dot(h, we3_ref) + be3_ref[...])               # lanes 0..7 real

    # --- decoder: two BN blocks then Linear + Sigmoid ---
    h = relu(dot(code, wd1_ref) + bd1_ref[...])
    h = relu(dot(h, wd2_ref) + bd2_ref[...])
    x_rec = jax.nn.sigmoid(dot(h, wd3_ref) + bd3_ref[...])    # lanes 0..15 real

    # --- BiNN bilinear: one matmul then 16 aligned lane blocks ---
    # m[b, j*128 + o] = sum_i x[b,i] * W[o,i,j]
    m = dot(x, wbf_ref)                                       # (Bt, 16*128)
    terms = [x_rec[:, j:j + 1] * m[:, LANES * j:LANES * (j + 1)]
             for j in range(IN_DIM)]
    while len(terms) > 1:                                     # tree reduction
        terms = [terms[i] + terms[i + 1] for i in range(0, len(terms), 2)]
    bl = terms[0] + bb_ref[...]                               # (Bt, 128)

    h = relu(dot(bl, wo1_ref) + bo1_ref[...])
    logit = jax.nn.sigmoid(dot(h, wo2_ref) + bo2_ref[...])    # lane 0 real

    # single lane-dense output slab (three aligned 128-lane stores, one DMA)
    out_ref[:, 0:LANES] = x_rec
    out_ref[:, LANES:2 * LANES] = code
    out_ref[:, 2 * LANES:3 * LANES] = logit


def aelocal_forward(x, kp):
    B = x.shape[0]
    if B % 256 == 0:
        block_b = 256
    elif B % 128 == 0 and B > 128:
        block_b = 128
    else:
        block_b = B
    grid = (B // block_b,)

    weight_args = (
        kp["we1"], kp["be1"], kp["we2"], kp["be2"], kp["we3"], kp["be3"],
        kp["wd1"], kp["bd1"], kp["wd2"], kp["bd2"], kp["wd3"], kp["bd3"],
        kp["wbf"], kp["bb"],
        kp["wo1"], kp["bo1"], kp["wo2"], kp["bo2"],
    )
    in_specs = [pl.BlockSpec((block_b, IN_DIM), lambda i: (i, 0))]
    in_specs += [pl.BlockSpec(w.shape, lambda i: (0, 0)) for w in weight_args]
    out_specs = pl.BlockSpec((block_b, 3 * LANES), lambda i: (i, 0))

    flops = 2 * B * (IN_DIM * 128 + 5 * 128 * 128
                     + IN_DIM * IN_DIM * 128 + 2 * 128 * 128)
    weight_bytes = sum(int(np.prod(w.shape)) * w.dtype.itemsize for w in weight_args)
    ce = pl.CostEstimate(
        flops=flops,
        transcendentals=2 * B * LANES,
        bytes_accessed=weight_bytes + B * IN_DIM * 4 + B * 3 * LANES * 4,
    )

    out = pl.pallas_call(
        aelocal_kernel,
        out_shape=jax.ShapeDtypeStruct((B, 3 * LANES), jnp.float32),
        grid=grid,
        in_specs=in_specs,
        out_specs=out_specs,
        compiler_params=pltpu.CompilerParams(dimension_semantics=("parallel",)),
        cost_estimate=ce,
    )(x, *weight_args)

    x_rec = out[:, :IN_DIM]
    code = out[:, LANES:LANES + UNIT]
    logit = out[:, 2 * LANES:2 * LANES + 1]
    return x_rec, code, logit


def init_params(key):
    """Raw f32 parameters mirroring the PyTorch module (eval-mode BN folded)."""
    keys = iter(jax.random.split(key, 64))
    nk = lambda: next(keys)

    def lin(fi, fo):
        w = jax.random.normal(nk(), (fi, fo), jnp.float32) * 0.1
        b = jax.random.normal(nk(), (fo,), jnp.float32) * 0.1
        return w, b

    def bn(f):
        gamma = jax.random.uniform(nk(), (f,), jnp.float32, minval=0.5, maxval=1.5)
        beta = jax.random.normal(nk(), (f,), jnp.float32) * 0.1
        mean = jax.random.normal(nk(), (f,), jnp.float32) * 0.1
        var = jax.random.uniform(nk(), (f,), jnp.float32, minval=0.5, maxval=1.5)
        return gamma, beta, mean, var

    def fold(w, b, f):
        # fold eval-mode BatchNorm1d into the preceding Linear (exact algebra)
        g, be, m, v = bn(f)
        s = g / jnp.sqrt(v + BN_EPS)
        return w * s[None, :], (b - m) * s + be

    p = {}
    # Conv1d(1,1,k) weights, zero-padded to a (4, 3) table
    cw = np.zeros((len(KERNELS), max(KERNELS)), np.float32)
    cw_rand = np.asarray(jax.random.normal(nk(), (len(KERNELS), max(KERNELS))),
                         np.float32) * 0.3
    for i, k in enumerate(KERNELS):
        cw[i, :k] = cw_rand[i, :k]
    p["conv_w"] = jnp.asarray(cw)
    p["conv_b"] = jax.random.normal(nk(), (len(KERNELS),), jnp.float32) * 0.1

    # encoder DIM->128->64->UNIT (folded BN)
    for name, (fi, fo) in zip(("e1", "e2", "e3"), ((DIM, 128), (128, 64), (64, UNIT))):
        w, b = lin(fi, fo)
        p["w" + name], p["b" + name] = fold(w, b, fo)
    # decoder UNIT->64->128 (BN blocks) then 128->IN_DIM plain Linear
    for name, (fi, fo) in zip(("d1", "d2"), ((UNIT, 64), (64, 128))):
        w, b = lin(fi, fo)
        p["w" + name], p["b" + name] = fold(w, b, fo)
    p["wd3"], p["bd3"] = lin(128, IN_DIM)

    # BiNN: nn.Bilinear(IN_DIM, IN_DIM, 128): weight (out=128, in1=16, in2=16)
    p["wb"] = jax.random.normal(nk(), (128, IN_DIM, IN_DIM), jnp.float32) * 0.05
    p["bb"] = jax.random.normal(nk(), (128,), jnp.float32) * 0.1
    w, b = lin(128, 64)
    p["wo1"], p["bo1"] = fold(w, b, 64)
    p["wo2"], p["bo2"] = lin(64, 1)
    return p


def prepare_kernel_params(p):
    """Host-side algebra: fold conv bank into we1, pad to 128 lanes, flatten
    the bilinear weight, and cast matmul weights to bf16 (biases stay f32)."""
    # feat = x @ Wconv + bconv  (banded, exact)
    wconv = np.zeros((IN_DIM, DIM), np.float32)
    bconv = np.zeros((DIM,), np.float32)
    cw = np.asarray(p["conv_w"])
    cb = np.asarray(p["conv_b"])
    off = 0
    for ci, k in enumerate(KERNELS):
        L = IN_DIM - k + 1
        for l in range(L):
            for t in range(k):
                wconv[l + t, off + l] = cw[ci, t]
            bconv[off + l] = cb[ci]
        off += L
    wconv = jnp.asarray(wconv)
    bconv = jnp.asarray(bconv)
    we1f = wconv @ p["we1"]                     # (16, 128)
    be1f = bconv @ p["we1"] + p["be1"]          # (128,)

    def pad_w(w):
        out = jnp.zeros((LANES, LANES), jnp.float32)
        return out.at[:w.shape[0], :w.shape[1]].set(w)

    def pad_b(b):
        out = jnp.zeros((1, LANES), jnp.float32)
        return out.at[0, :b.shape[0]].set(b)

    bf = lambda w: w.astype(jnp.bfloat16)
    # bilinear weight flattened: wbf[i, j*128 + o] = W[o, i, j]
    wbf = jnp.transpose(p["wb"], (1, 2, 0)).reshape(IN_DIM, IN_DIM * LANES)

    return {
        "we1": bf(we1f), "be1": be1f[None, :],
        "we2": bf(pad_w(p["we2"])), "be2": pad_b(p["be2"]),
        "we3": bf(pad_w(p["we3"])), "be3": pad_b(p["be3"]),
        "wd1": bf(pad_w(p["wd1"])), "bd1": pad_b(p["bd1"]),
        "wd2": bf(pad_w(p["wd2"])), "bd2": pad_b(p["bd2"]),
        "wd3": bf(pad_w(p["wd3"])), "bd3": pad_b(p["bd3"]),
        "wbf": bf(wbf), "bb": p["bb"][None, :],
        "wo1": bf(pad_w(p["wo1"])), "bo1": pad_b(p["bo1"]),
        "wo2": bf(pad_w(p["wo2"])), "bo2": pad_b(p["bo2"]),
    }


def reference(x, p):
    """Pure-JAX f32 reference matching the PyTorch forward (eval mode)."""
    feats = []
    for ci, k in enumerate(KERNELS):
        L = IN_DIM - k + 1
        acc = jnp.zeros((x.shape[0], L), jnp.float32) + p["conv_b"][ci]
        for t in range(k):
            acc = acc + p["conv_w"][ci, t] * x[:, t:t + L]
        feats.append(acc)
    feat = jnp.concatenate(feats, axis=-1)
    relu = lambda z: jnp.maximum(z, 0.0)
    h = relu(feat @ p["we1"] + p["be1"])
    h = relu(h @ p["we2"] + p["be2"])
    code = relu(h @ p["we3"] + p["be3"])
    h = relu(code @ p["wd1"] + p["bd1"])
    h = relu(h @ p["wd2"] + p["bd2"])
    x_rec = jax.nn.sigmoid(h @ p["wd3"] + p["bd3"])
    bl = jnp.einsum("bi,oij,bj->bo", x, p["wb"], x_rec) + p["bb"]
    h = relu(bl @ p["wo1"] + p["bo1"])
    logit = jax.nn.sigmoid(h @ p["wo2"] + p["bo2"])
    return x_rec, code, logit


if __name__ == "__main__":
    key = jax.random.PRNGKey(0)
    k_param, k_x = jax.random.split(key)
    raw = init_params(k_param)
    kparams = prepare_kernel_params(raw)
    x = jax.random.uniform(k_x, (BATCH, IN_DIM), jnp.float32)

    x_rec, code, logit = jax.block_until_ready(jax.jit(aelocal_forward)(x, kparams))

    assert x_rec.shape == (BATCH, IN_DIM)
    assert code.shape == (BATCH, UNIT)
    assert logit.shape == (BATCH, 1)

    r_xrec, r_code, r_logit = reference(x, raw)
    # tolerance covers bf16 MXU operands vs. the f32 reference (~1e-3 level)
    np.testing.assert_allclose(np.asarray(x_rec), np.asarray(r_xrec), rtol=2e-2, atol=1e-2)
    np.testing.assert_allclose(np.asarray(code), np.asarray(r_code), rtol=2e-2, atol=1e-2)
    np.testing.assert_allclose(np.asarray(logit), np.asarray(r_logit), rtol=2e-2, atol=1e-2)

    print("KERNEL_OK")
</pallas_src>

<mosaic_0001>
module attributes {stable_mosaic.version = 11 : i64} {
  func.func @aelocal_kernel(%arg0: i32, %arg1: memref<8x16xf32, #tpu.memory_space<vmem>>, %arg2: memref<16x128xbf16, #tpu.memory_space<vmem>>, %arg3: memref<1x128xf32, #tpu.memory_space<vmem>>, %arg4: memref<128x128xbf16, #tpu.memory_space<vmem>>, %arg5: memref<1x128xf32, #tpu.memory_space<vmem>>, %arg6: memref<128x128xbf16, #tpu.memory_space<vmem>>, %arg7: memref<1x128xf32, #tpu.memory_space<vmem>>, %arg8: memref<128x128xbf16, #tpu.memory_space<vmem>>, %arg9: memref<1x128xf32, #tpu.memory_space<vmem>>, %arg10: memref<128x128xbf16, #tpu.memory_space<vmem>>, %arg11: memref<1x128xf32, #tpu.memory_space<vmem>>, %arg12: memref<128x128xbf16, #tpu.memory_space<vmem>>, %arg13: memref<1x128xf32, #tpu.memory_space<vmem>>, %arg14: memref<16x2048xbf16, #tpu.memory_space<vmem>>, %arg15: memref<1x128xf32, #tpu.memory_space<vmem>>, %arg16: memref<128x128xbf16, #tpu.memory_space<vmem>>, %arg17: memref<1x128xf32, #tpu.memory_space<vmem>>, %arg18: memref<128x128xbf16, #tpu.memory_space<vmem>>, %arg19: memref<1x128xf32, #tpu.memory_space<vmem>>, %arg20: memref<8x384xf32, #tpu.memory_space<vmem>>) attributes {dimension_semantics = [#tpu.dimension_semantics<parallel>], iteration_bounds = array<i64: 1>, scalar_prefetch = 0 : i64, scratch_operands = 0 : i64, tpu.core_type = #tpu.core_type<tc>, window_params = [{transform_indices = @transform_0, window_bounds = array<i64: 8, 16>}, {pipeline_mode = #tpu.pipeline_mode<synchronous>, transform_indices = @transform_1, window_bounds = array<i64: 16, 128>}, {pipeline_mode = #tpu.pipeline_mode<synchronous>, transform_indices = @transform_2, window_bounds = array<i64: 1, 128>}, {pipeline_mode = #tpu.pipeline_mode<synchronous>, transform_indices = @transform_3, window_bounds = array<i64: 128, 128>}, {pipeline_mode = #tpu.pipeline_mode<synchronous>, transform_indices = @transform_4, window_bounds = array<i64: 1, 128>}, {pipeline_mode = #tpu.pipeline_mode<synchronous>, transform_indices = @transform_5, window_bounds = array<i64: 128, 128>}, {pipeline_mode = #tpu.pipeline_mode<synchronous>, transform_indices = @transform_6, window_bounds = array<i64: 1, 128>}, {pipeline_mode = #tpu.pipeline_mode<synchronous>, transform_indices = @transform_7, window_bounds = array<i64: 128, 128>}, {pipeline_mode = #tpu.pipeline_mode<synchronous>, transform_indices = @transform_8, window_bounds = array<i64: 1, 128>}, {pipeline_mode = #tpu.pipeline_mode<synchronous>, transform_indices = @transform_9, window_bounds = array<i64: 128, 128>}, {pipeline_mode = #tpu.pipeline_mode<synchronous>, transform_indices = @transform_10, window_bounds = array<i64: 1, 128>}, {pipeline_mode = #tpu.pipeline_mode<synchronous>, transform_indices = @transform_11, window_bounds = array<i64: 128, 128>}, {pipeline_mode = #tpu.pipeline_mode<synchronous>, transform_indices = @transform_12, window_bounds = array<i64: 1, 128>}, {pipeline_mode = #tpu.pipeline_mode<synchronous>, transform_indices = @transform_13, window_bounds = array<i64: 16, 2048>}, {pipeline_mode = #tpu.pipeline_mode<synchronous>, transform_indices = @transform_14, window_bounds = array<i64: 1, 128>}, {pipeline_mode = #tpu.pipeline_mode<synchronous>, transform_indices = @transform_15, window_bounds = array<i64: 128, 128>}, {pipeline_mode = #tpu.pipeline_mode<synchronous>, transform_indices = @transform_16, window_bounds = array<i64: 1, 128>}, {pipeline_mode = #tpu.pipeline_mode<synchronous>, transform_indices = @transform_17, window_bounds = array<i64: 128, 128>}, {pipeline_mode = #tpu.pipeline_mode<synchronous>, transform_indices = @transform_18, window_bounds = array<i64: 1, 128>}, {transform_indices = @transform_19, window_bounds = array<i64: 8, 384>}]} {
    %c0 = arith.constant 0 : index
    %c0_0 = arith.constant 0 : index
    %0 = vector.load %arg1[%c0, %c0_0] : memref<8x16xf32, #tpu.memory_space<vmem>>, vector<8x16xf32>
    %1 = arith.truncf %0 : vector<8x16xf32> to vector<8x16xbf16>
    %c0_1 = arith.constant 0 : index
    %c0_2 = arith.constant 0 : index
    %2 = vector.load %arg2[%c0_1, %c0_2] : memref<16x128xbf16, #tpu.memory_space<vmem>>, vector<16x128xbf16>
    %cst = arith.constant dense<0.000000e+00> : vector<8x128xf32>
    %3 = tpu.matmul %1, %2, %cst {dimension_numbers = #tpu.dot_dimension_numbers<[1], [0], [0], [1], [0, 0, 1, 1], [], []>} : vector<8x16xbf16>, vector<16x128xbf16>, vector<8x128xf32> -> vector<8x128xf32>
    %c0_3 = arith.constant 0 : index
    %c0_4 = arith.constant 0 : index
    %4 = vector.load %arg3[%c0_3, %c0_4] : memref<1x128xf32, #tpu.memory_space<vmem>>, vector<1x128xf32>
    %5 = vector.broadcast %4 : vector<1x128xf32> to vector<8x128xf32>
    %6 = arith.addf %3, %5 : vector<8x128xf32>
    %cst_5 = arith.constant 0.000000e+00 : f32
    %7 = vector.broadcast %cst_5 : f32 to vector<8x128xf32>
    %8 = arith.maximumf %6, %7 : vector<8x128xf32>
    %9 = arith.truncf %8 : vector<8x128xf32> to vector<8x128xbf16>
    %c0_6 = arith.constant 0 : index
    %c0_7 = arith.constant 0 : index
    %10 = vector.load %arg4[%c0_6, %c0_7] : memref<128x128xbf16, #tpu.memory_space<vmem>>, vector<128x128xbf16>
    %cst_8 = arith.constant dense<0.000000e+00> : vector<8x128xf32>
    %11 = tpu.matmul %9, %10, %cst_8 {dimension_numbers = #tpu.dot_dimension_numbers<[1], [0], [0], [1], [0, 0, 1, 1], [], []>} : vector<8x128xbf16>, vector<128x128xbf16>, vector<8x128xf32> -> vector<8x128xf32>
    %c0_9 = arith.constant 0 : index
    %c0_10 = arith.constant 0 : index
    %12 = vector.load %arg5[%c0_9, %c0_10] : memref<1x128xf32, #tpu.memory_space<vmem>>, vector<1x128xf32>
    %13 = vector.broadcast %12 : vector<1x128xf32> to vector<8x128xf32>
    %14 = arith.addf %11, %13 : vector<8x128xf32>
    %cst_11 = arith.constant 0.000000e+00 : f32
    %15 = vector.broadcast %cst_11 : f32 to vector<8x128xf32>
    %16 = arith.maximumf %14, %15 : vector<8x128xf32>
    %17 = arith.truncf %16 : vector<8x128xf32> to vector<8x128xbf16>
    %c0_12 = arith.constant 0 : index
    %c0_13 = arith.constant 0 : index
    %18 = vector.load %arg6[%c0_12, %c0_13] : memref<128x128xbf16, #tpu.memory_space<vmem>>, vector<128x128xbf16>
    %cst_14 = arith.constant dense<0.000000e+00> : vector<8x128xf32>
    %19 = tpu.matmul %17, %18, %cst_14 {dimension_numbers = #tpu.dot_dimension_numbers<[1], [0], [0], [1], [0, 0, 1, 1], [], []>} : vector<8x128xbf16>, vector<128x128xbf16>, vector<8x128xf32> -> vector<8x128xf32>
    %c0_15 = arith.constant 0 : index
    %c0_16 = arith.constant 0 : index
    %20 = vector.load %arg7[%c0_15, %c0_16] : memref<1x128xf32, #tpu.memory_space<vmem>>, vector<1x128xf32>
    %21 = vector.broadcast %20 : vector<1x128xf32> to vector<8x128xf32>
    %22 = arith.addf %19, %21 : vector<8x128xf32>
    %cst_17 = arith.constant 0.000000e+00 : f32
    %23 = vector.broadcast %cst_17 : f32 to vector<8x128xf32>
    %24 = arith.maximumf %22, %23 : vector<8x128xf32>
    %25 = arith.truncf %24 : vector<8x128xf32> to vector<8x128xbf16>
    %c0_18 = arith.constant 0 : index
    %c0_19 = arith.constant 0 : index
    %26 = vector.load %arg8[%c0_18, %c0_19] : memref<128x128xbf16, #tpu.memory_space<vmem>>, vector<128x128xbf16>
    %cst_20 = arith.constant dense<0.000000e+00> : vector<8x128xf32>
    %27 = tpu.matmul %25, %26, %cst_20 {dimension_numbers = #tpu.dot_dimension_numbers<[1], [0], [0], [1], [0, 0, 1, 1], [], []>} : vector<8x128xbf16>, vector<128x128xbf16>, vector<8x128xf32> -> vector<8x128xf32>
    %c0_21 = arith.constant 0 : index
    %c0_22 = arith.constant 0 : index
    %28 = vector.load %arg9[%c0_21, %c0_22] : memref<1x128xf32, #tpu.memory_space<vmem>>, vector<1x128xf32>
    %29 = vector.broadcast %28 : vector<1x128xf32> to vector<8x128xf32>
    %30 = arith.addf %27, %29 : vector<8x128xf32>
    %cst_23 = arith.constant 0.000000e+00 : f32
    %31 = vector.broadcast %cst_23 : f32 to vector<8x128xf32>
    %32 = arith.maximumf %30, %31 : vector<8x128xf32>
    %33 = arith.truncf %32 : vector<8x128xf32> to vector<8x128xbf16>
    %c0_24 = arith.constant 0 : index
    %c0_25 = arith.constant 0 : index
    %34 = vector.load %arg10[%c0_24, %c0_25] : memref<128x128xbf16, #tpu.memory_space<vmem>>, vector<128x128xbf16>
    %cst_26 = arith.constant dense<0.000000e+00> : vector<8x128xf32>
    %35 = tpu.matmul %33, %34, %cst_26 {dimension_numbers = #tpu.dot_dimension_numbers<[1], [0], [0], [1], [0, 0, 1, 1], [], []>} : vector<8x128xbf16>, vector<128x128xbf16>, vector<8x128xf32> -> vector<8x128xf32>
    %c0_27 = arith.constant 0 : index
    %c0_28 = arith.constant 0 : index
    %36 = vector.load %arg11[%c0_27, %c0_28] : memref<1x128xf32, #tpu.memory_space<vmem>>, vector<1x128xf32>
    %37 = vector.broadcast %36 : vector<1x128xf32> to vector<8x128xf32>
    %38 = arith.addf %35, %37 : vector<8x128xf32>
    %cst_29 = arith.constant 0.000000e+00 : f32
    %39 = vector.broadcast %cst_29 : f32 to vector<8x128xf32>
    %40 = arith.maximumf %38, %39 : vector<8x128xf32>
    %41 = arith.truncf %40 : vector<8x128xf32> to vector<8x128xbf16>
    %c0_30 = arith.constant 0 : index
    %c0_31 = arith.constant 0 : index
    %42 = vector.load %arg12[%c0_30, %c0_31] : memref<128x128xbf16, #tpu.memory_space<vmem>>, vector<128x128xbf16>
    %cst_32 = arith.constant dense<0.000000e+00> : vector<8x128xf32>
    %43 = tpu.matmul %41, %42, %cst_32 {dimension_numbers = #tpu.dot_dimension_numbers<[1], [0], [0], [1], [0, 0, 1, 1], [], []>} : vector<8x128xbf16>, vector<128x128xbf16>, vector<8x128xf32> -> vector<8x128xf32>
    %c0_33 = arith.constant 0 : index
    %c0_34 = arith.constant 0 : index
    %44 = vector.load %arg13[%c0_33, %c0_34] : memref<1x128xf32, #tpu.memory_space<vmem>>, vector<1x128xf32>
    %45 = vector.broadcast %44 : vector<1x128xf32> to vector<8x128xf32>
    %46 = arith.addf %43, %45 : vector<8x128xf32>
    %47 = arith.negf %46 : vector<8x128xf32>
    %48 = math.exp %47 : vector<8x128xf32>
    %cst_35 = arith.constant 1.000000e+00 : f32
    %49 = vector.broadcast %cst_35 : f32 to vector<8x128xf32>
    %50 = arith.addf %49, %48 : vector<8x128xf32>
    %51 = arith.divf %49, %50 : vector<8x128xf32>
    %52 = arith.truncf %0 : vector<8x16xf32> to vector<8x16xbf16>
    %c0_36 = arith.constant 0 : index
    %c0_37 = arith.constant 0 : index
    %53 = vector.load %arg14[%c0_36, %c0_37] : memref<16x2048xbf16, #tpu.memory_space<vmem>>, vector<16x2048xbf16>
    %cst_38 = arith.constant dense<0.000000e+00> : vector<8x2048xf32>
    %54 = tpu.matmul %52, %53, %cst_38 {dimension_numbers = #tpu.dot_dimension_numbers<[1], [0], [0], [1], [0, 0, 1, 1], [], []>} : vector<8x16xbf16>, vector<16x2048xbf16>, vector<8x2048xf32> -> vector<8x2048xf32>
    %55 = vector.extract_strided_slice %51 {offsets = [0, 0], sizes = [8, 1], strides = [1, 1]} : vector<8x128xf32> to vector<8x1xf32>
    %56 = vector.extract_strided_slice %54 {offsets = [0, 0], sizes = [8, 128], strides = [1, 1]} : vector<8x2048xf32> to vector<8x128xf32>
    %57 = vector.broadcast %55 : vector<8x1xf32> to vector<8x128xf32>
    %58 = arith.mulf %57, %56 : vector<8x128xf32>
    %59 = vector.extract_strided_slice %51 {offsets = [0, 1], sizes = [8, 1], strides = [1, 1]} : vector<8x128xf32> to vector<8x1xf32>
    %60 = vector.extract_strided_slice %54 {offsets = [0, 128], sizes = [8, 128], strides = [1, 1]} : vector<8x2048xf32> to vector<8x128xf32>
    %61 = vector.broadcast %59 : vector<8x1xf32> to vector<8x128xf32>
    %62 = arith.mulf %61, %60 : vector<8x128xf32>
    %63 = vector.extract_strided_slice %51 {offsets = [0, 2], sizes = [8, 1], strides = [1, 1]} : vector<8x128xf32> to vector<8x1xf32>
    %64 = vector.extract_strided_slice %54 {offsets = [0, 256], sizes = [8, 128], strides = [1, 1]} : vector<8x2048xf32> to vector<8x128xf32>
    %65 = vector.broadcast %63 : vector<8x1xf32> to vector<8x128xf32>
    %66 = arith.mulf %65, %64 : vector<8x128xf32>
    %67 = vector.extract_strided_slice %51 {offsets = [0, 3], sizes = [8, 1], strides = [1, 1]} : vector<8x128xf32> to vector<8x1xf32>
    %68 = vector.extract_strided_slice %54 {offsets = [0, 384], sizes = [8, 128], strides = [1, 1]} : vector<8x2048xf32> to vector<8x128xf32>
    %69 = vector.broadcast %67 : vector<8x1xf32> to vector<8x128xf32>
    %70 = arith.mulf %69, %68 : vector<8x128xf32>
    %71 = vector.extract_strided_slice %51 {offsets = [0, 4], sizes = [8, 1], strides = [1, 1]} : vector<8x128xf32> to vector<8x1xf32>
    %72 = vector.extract_strided_slice %54 {offsets = [0, 512], sizes = [8, 128], strides = [1, 1]} : vector<8x2048xf32> to vector<8x128xf32>
    %73 = vector.broadcast %71 : vector<8x1xf32> to vector<8x128xf32>
    %74 = arith.mulf %73, %72 : vector<8x128xf32>
    %75 = vector.extract_strided_slice %51 {offsets = [0, 5], sizes = [8, 1], strides = [1, 1]} : vector<8x128xf32> to vector<8x1xf32>
    %76 = vector.extract_strided_slice %54 {offsets = [0, 640], sizes = [8, 128], strides = [1, 1]} : vector<8x2048xf32> to vector<8x128xf32>
    %77 = vector.broadcast %75 : vector<8x1xf32> to vector<8x128xf32>
    %78 = arith.mulf %77, %76 : vector<8x128xf32>
    %79 = vector.extract_strided_slice %51 {offsets = [0, 6], sizes = [8, 1], strides = [1, 1]} : vector<8x128xf32> to vector<8x1xf32>
    %80 = vector.extract_strided_slice %54 {offsets = [0, 768], sizes = [8, 128], strides = [1, 1]} : vector<8x2048xf32> to vector<8x128xf32>
    %81 = vector.broadcast %79 : vector<8x1xf32> to vector<8x128xf32>
    %82 = arith.mulf %81, %80 : vector<8x128xf32>
    %83 = vector.extract_strided_slice %51 {offsets = [0, 7], sizes = [8, 1], strides = [1, 1]} : vector<8x128xf32> to vector<8x1xf32>
    %84 = vector.extract_strided_slice %54 {offsets = [0, 896], sizes = [8, 128], strides = [1, 1]} : vector<8x2048xf32> to vector<8x128xf32>
    %85 = vector.broadcast %83 : vector<8x1xf32> to vector<8x128xf32>
    %86 = arith.mulf %85, %84 : vector<8x128xf32>
    %87 = vector.extract_strided_slice %51 {offsets = [0, 8], sizes = [8, 1], strides = [1, 1]} : vector<8x128xf32> to vector<8x1xf32>
    %88 = vector.extract_strided_slice %54 {offsets = [0, 1024], sizes = [8, 128], strides = [1, 1]} : vector<8x2048xf32> to vector<8x128xf32>
    %89 = vector.broadcast %87 : vector<8x1xf32> to vector<8x128xf32>
    %90 = arith.mulf %89, %88 : vector<8x128xf32>
    %91 = vector.extract_strided_slice %51 {offsets = [0, 9], sizes = [8, 1], strides = [1, 1]} : vector<8x128xf32> to vector<8x1xf32>
    %92 = vector.extract_strided_slice %54 {offsets = [0, 1152], sizes = [8, 128], strides = [1, 1]} : vector<8x2048xf32> to vector<8x128xf32>
    %93 = vector.broadcast %91 : vector<8x1xf32> to vector<8x128xf32>
    %94 = arith.mulf %93, %92 : vector<8x128xf32>
    %95 = vector.extract_strided_slice %51 {offsets = [0, 10], sizes = [8, 1], strides = [1, 1]} : vector<8x128xf32> to vector<8x1xf32>
    %96 = vector.extract_strided_slice %54 {offsets = [0, 1280], sizes = [8, 128], strides = [1, 1]} : vector<8x2048xf32> to vector<8x128xf32>
    %97 = vector.broadcast %95 : vector<8x1xf32> to vector<8x128xf32>
    %98 = arith.mulf %97, %96 : vector<8x128xf32>
    %99 = vector.extract_strided_slice %51 {offsets = [0, 11], sizes = [8, 1], strides = [1, 1]} : vector<8x128xf32> to vector<8x1xf32>
    %100 = vector.extract_strided_slice %54 {offsets = [0, 1408], sizes = [8, 128], strides = [1, 1]} : vector<8x2048xf32> to vector<8x128xf32>
    %101 = vector.broadcast %99 : vector<8x1xf32> to vector<8x128xf32>
    %102 = arith.mulf %101, %100 : vector<8x128xf32>
    %103 = vector.extract_strided_slice %51 {offsets = [0, 12], sizes = [8, 1], strides = [1, 1]} : vector<8x128xf32> to vector<8x1xf32>
    %104 = vector.extract_strided_slice %54 {offsets = [0, 1536], sizes = [8, 128], strides = [1, 1]} : vector<8x2048xf32> to vector<8x128xf32>
    %105 = vector.broadcast %103 : vector<8x1xf32> to vector<8x128xf32>
    %106 = arith.mulf %105, %104 : vector<8x128xf32>
    %107 = vector.extract_strided_slice %51 {offsets = [0, 13], sizes = [8, 1], strides = [1, 1]} : vector<8x128xf32> to vector<8x1xf32>
    %108 = vector.extract_strided_slice %54 {offsets = [0, 1664], sizes = [8, 128], strides = [1, 1]} : vector<8x2048xf32> to vector<8x128xf32>
    %109 = vector.broadcast %107 : vector<8x1xf32> to vector<8x128xf32>
    %110 = arith.mulf %109, %108 : vector<8x128xf32>
    %111 = vector.extract_strided_slice %51 {offsets = [0, 14], sizes = [8, 1], strides = [1, 1]} : vector<8x128xf32> to vector<8x1xf32>
    %112 = vector.extract_strided_slice %54 {offsets = [0, 1792], sizes = [8, 128], strides = [1, 1]} : vector<8x2048xf32> to vector<8x128xf32>
    %113 = vector.broadcast %111 : vector<8x1xf32> to vector<8x128xf32>
    %114 = arith.mulf %113, %112 : vector<8x128xf32>
    %115 = vector.extract_strided_slice %51 {offsets = [0, 15], sizes = [8, 1], strides = [1, 1]} : vector<8x128xf32> to vector<8x1xf32>
    %116 = vector.extract_strided_slice %54 {offsets = [0, 1920], sizes = [8, 128], strides = [1, 1]} : vector<8x2048xf32> to vector<8x128xf32>
    %117 = vector.broadcast %115 : vector<8x1xf32> to vector<8x128xf32>
    %118 = arith.mulf %117, %116 : vector<8x128xf32>
    %119 = arith.addf %58, %62 : vector<8x128xf32>
    %120 = arith.addf %66, %70 : vector<8x128xf32>
    %121 = arith.addf %74, %78 : vector<8x128xf32>
    %122 = arith.addf %82, %86 : vector<8x128xf32>
    %123 = arith.addf %90, %94 : vector<8x128xf32>
    %124 = arith.addf %98, %102 : vector<8x128xf32>
    %125 = arith.addf %106, %110 : vector<8x128xf32>
    %126 = arith.addf %114, %118 : vector<8x128xf32>
    %127 = arith.addf %119, %120 : vector<8x128xf32>
    %128 = arith.addf %121, %122 : vector<8x128xf32>
    %129 = arith.addf %123, %124 : vector<8x128xf32>
    %130 = arith.addf %125, %126 : vector<8x128xf32>
    %131 = arith.addf %127, %128 : vector<8x128xf32>
    %132 = arith.addf %129, %130 : vector<8x128xf32>
    %133 = arith.addf %131, %132 : vector<8x128xf32>
    %c0_39 = arith.constant 0 : index
    %c0_40 = arith.constant 0 : index
    %134 = vector.load %arg15[%c0_39, %c0_40] : memref<1x128xf32, #tpu.memory_space<vmem>>, vector<1x128xf32>
    %135 = vector.broadcast %134 : vector<1x128xf32> to vector<8x128xf32>
    %136 = arith.addf %133, %135 : vector<8x128xf32>
    %137 = arith.truncf %136 : vector<8x128xf32> to vector<8x128xbf16>
    %c0_41 = arith.constant 0 : index
    %c0_42 = arith.constant 0 : index
    %138 = vector.load %arg16[%c0_41, %c0_42] : memref<128x128xbf16, #tpu.memory_space<vmem>>, vector<128x128xbf16>
    %cst_43 = arith.constant dense<0.000000e+00> : vector<8x128xf32>
    %139 = tpu.matmul %137, %138, %cst_43 {dimension_numbers = #tpu.dot_dimension_numbers<[1], [0], [0], [1], [0, 0, 1, 1], [], []>} : vector<8x128xbf16>, vector<128x128xbf16>, vector<8x128xf32> -> vector<8x128xf32>
    %c0_44 = arith.constant 0 : index
    %c0_45 = arith.constant 0 : index
    %140 = vector.load %arg17[%c0_44, %c0_45] : memref<1x128xf32, #tpu.memory_space<vmem>>, vector<1x128xf32>
    %141 = vector.broadcast %140 : vector<1x128xf32> to vector<8x128xf32>
    %142 = arith.addf %139, %141 : vector<8x128xf32>
    %cst_46 = arith.constant 0.000000e+00 : f32
    %143 = vector.broadcast %cst_46 : f32 to vector<8x128xf32>
    %144 = arith.maximumf %142, %143 : vector<8x128xf32>
    %145 = arith.truncf %144 : vector<8x128xf32> to vector<8x128xbf16>
    %c0_47 = arith.constant 0 : index
    %c0_48 = arith.constant 0 : index
    %146 = vector.load %arg18[%c0_47, %c0_48] : memref<128x128xbf16, #tpu.memory_space<vmem>>, vector<128x128xbf16>
    %cst_49 = arith.constant dense<0.000000e+00> : vector<8x128xf32>
    %147 = tpu.matmul %145, %146, %cst_49 {dimension_numbers = #tpu.dot_dimension_numbers<[1], [0], [0], [1], [0, 0, 1, 1], [], []>} : vector<8x128xbf16>, vector<128x128xbf16>, vector<8x128xf32> -> vector<8x128xf32>
    %c0_50 = arith.constant 0 : index
    %c0_51 = arith.constant 0 : index
    %148 = vector.load %arg19[%c0_50, %c0_51] : memref<1x128xf32, #tpu.memory_space<vmem>>, vector<1x128xf32>
    %149 = vector.broadcast %148 : vector<1x128xf32> to vector<8x128xf32>
    %150 = arith.addf %147, %149 : vector<8x128xf32>
    %151 = arith.negf %150 : vector<8x128xf32>
    %152 = math.exp %151 : vector<8x128xf32>
    %cst_52 = arith.constant 1.000000e+00 : f32
    %153 = vector.broadcast %cst_52 : f32 to vector<8x128xf32>
    %154 = arith.addf %153, %152 : vector<8x128xf32>
    %155 = arith.divf %153, %154 : vector<8x128xf32>
    %c0_53 = arith.constant 0 : index
    %c0_54 = arith.constant 0 : index
    %156 = vector.load %arg20[%c0_53, %c0_54] : memref<8x384xf32, #tpu.memory_space<vmem>>, vector<8x128xf32>
    tpu.vector_store %arg20[%c0_53, %c0_54], %51 {strides = array<i32>} : memref<8x384xf32, #tpu.memory_space<vmem>>, vector<8x128xf32>,
    %c0_55 = arith.constant 0 : index
    %c128 = arith.constant 128 : index
    %157 = vector.load %arg20[%c0_55, %c128] : memref<8x384xf32, #tpu.memory_space<vmem>>, vector<8x128xf32>
    tpu.vector_store %arg20[%c0_55, %c128], %24 {strides = array<i32>} : memref<8x384xf32, #tpu.memory_space<vmem>>, vector<8x128xf32>,
    %c0_56 = arith.constant 0 : index
    %c256 = arith.constant 256 : index
    %158 = vector.load %arg20[%c0_56, %c256] : memref<8x384xf32, #tpu.memory_space<vmem>>, vector<8x128xf32>
    tpu.vector_store %arg20[%c0_56, %c256], %155 {strides = array<i32>} : memref<8x384xf32, #tpu.memory_space<vmem>>, vector<8x128xf32>,
    return
  }
  func.func @transform_0(%arg0: i32) -> (i32, i32) {
    %c0_i32 = arith.constant 0 : i32
    %c0_i32_0 = arith.constant 0 : i32
    return %arg0, %c0_i32 : i32, i32
  }
  func.func @transform_1(%arg0: i32) -> (i32, i32) {
    %c0_i32 = arith.constant 0 : i32
    %c0_i32_0 = arith.constant 0 : i32
    %c0_i32_1 = arith.constant 0 : i32
    return %c0_i32, %c0_i32_0 : i32, i32
  }
  func.func @transform_2(%arg0: i32) -> (i32, i32) {
    %c0_i32 = arith.constant 0 : i32
    %c0_i32_0 = arith.constant 0 : i32
    %c0_i32_1 = arith.constant 0 : i32
    return %c0_i32, %c0_i32_0 : i32, i32
  }
  func.func @transform_3(%arg0: i32) -> (i32, i32) {
    %c0_i32 = arith.constant 0 : i32
    %c0_i32_0 = arith.constant 0 : i32
    %c0_i32_1 = arith.constant 0 : i32
    return %c0_i32, %c0_i32_0 : i32, i32
  }
  func.func @transform_4(%arg0: i32) -> (i32, i32) {
    %c0_i32 = arith.constant 0 : i32
    %c0_i32_0 = arith.constant 0 : i32
    %c0_i32_1 = arith.constant 0 : i32
    return %c0_i32, %c0_i32_0 : i32, i32
  }
  func.func @transform_5(%arg0: i32) -> (i32, i32) {
    %c0_i32 = arith.constant 0 : i32
    %c0_i32_0 = arith.constant 0 : i32
    %c0_i32_1 = arith.constant 0 : i32
    return %c0_i32, %c0_i32_0 : i32, i32
  }
  func.func @transform_6(%arg0: i32) -> (i32, i32) {
    %c0_i32 = arith.constant 0 : i32
    %c0_i32_0 = arith.constant 0 : i32
    %c0_i32_1 = arith.constant 0 : i32
    return %c0_i32, %c0_i32_0 : i32, i32
  }
  func.func @transform_7(%arg0: i32) -> (i32, i32) {
    %c0_i32 = arith.constant 0 : i32
    %c0_i32_0 = arith.constant 0 : i32
    %c0_i32_1 = arith.constant 0 : i32
    return %c0_i32, %c0_i32_0 : i32, i32
  }
  func.func @transform_8(%arg0: i32) -> (i32, i32) {
    %c0_i32 = arith.constant 0 : i32
    %c0_i32_0 = arith.constant 0 : i32
    %c0_i32_1 = arith.constant 0 : i32
    return %c0_i32, %c0_i32_0 : i32, i32
  }
  func.func @transform_9(%arg0: i32) -> (i32, i32) {
    %c0_i32 = arith.constant 0 : i32
    %c0_i32_0 = arith.constant 0 : i32
    %c0_i32_1 = arith.constant 0 : i32
    return %c0_i32, %c0_i32_0 : i32, i32
  }
  func.func @transform_10(%arg0: i32) -> (i32, i32) {
    %c0_i32 = arith.constant 0 : i32
    %c0_i32_0 = arith.constant 0 : i32
    %c0_i32_1 = arith.constant 0 : i32
    return %c0_i32, %c0_i32_0 : i32, i32
  }
  func.func @transform_11(%arg0: i32) -> (i32, i32) {
    %c0_i32 = arith.constant 0 : i32
    %c0_i32_0 = arith.constant 0 : i32
    %c0_i32_1 = arith.constant 0 : i32
    return %c0_i32, %c0_i32_0 : i32, i32
  }
  func.func @transform_12(%arg0: i32) -> (i32, i32) {
    %c0_i32 = arith.constant 0 : i32
    %c0_i32_0 = arith.constant 0 : i32
    %c0_i32_1 = arith.constant 0 : i32
    return %c0_i32, %c0_i32_0 : i32, i32
  }
  func.func @transform_13(%arg0: i32) -> (i32, i32) {
    %c0_i32 = arith.constant 0 : i32
    %c0_i32_0 = arith.constant 0 : i32
    %c0_i32_1 = arith.constant 0 : i32
    return %c0_i32, %c0_i32_0 : i32, i32
  }
  func.func @transform_14(%arg0: i32) -> (i32, i32) {
    %c0_i32 = arith.constant 0 : i32
    %c0_i32_0 = arith.constant 0 : i32
    %c0_i32_1 = arith.constant 0 : i32
    return %c0_i32, %c0_i32_0 : i32, i32
  }
  func.func @transform_15(%arg0: i32) -> (i32, i32) {
    %c0_i32 = arith.constant 0 : i32
    %c0_i32_0 = arith.constant 0 : i32
    %c0_i32_1 = arith.constant 0 : i32
    return %c0_i32, %c0_i32_0 : i32, i32
  }
  func.func @transform_16(%arg0: i32) -> (i32, i32) {
    %c0_i32 = arith.constant 0 : i32
    %c0_i32_0 = arith.constant 0 : i32
    %c0_i32_1 = arith.constant 0 : i32
    return %c0_i32, %c0_i32_0 : i32, i32
  }
  func.func @transform_17(%arg0: i32) -> (i32, i32) {
    %c0_i32 = arith.constant 0 : i32
    %c0_i32_0 = arith.constant 0 : i32
    %c0_i32_1 = arith.constant 0 : i32
    return %c0_i32, %c0_i32_0 : i32, i32
  }
  func.func @transform_18(%arg0: i32) -> (i32, i32) {
    %c0_i32 = arith.constant 0 : i32
    %c0_i32_0 = arith.constant 0 : i32
    %c0_i32_1 = arith.constant 0 : i32
    return %c0_i32, %c0_i32_0 : i32, i32
  }
  func.func @transform_19(%arg0: i32) -> (i32, i32) {
    %c0_i32 = arith.constant 0 : i32
    %c0_i32_0 = arith.constant 0 : i32
    return %arg0, %c0_i32 : i32, i32
  }
}

</mosaic_0001>

<bundles_post_ra>
// kernel: aelocal_forward.1
= control target key start
LH: loop header
LB: loop body
LE: loop exit
PB: predicated region body
PF: predicated region fallthrough
CT: control target
= control target key end

     0   :  { %s3122_s0 = inlined_call_operand.hbm [shape: f32[8,16], index: 0, kind: input, shape index: {}]   ;;  %s3123_s1 = inlined_call_operand.hbm [shape: bf16[16,128], index: 1, kind: input, shape index: {}]   ;;  %s3124_s2 = inlined_call_operand.hbm [shape: f32[1,128], index: 2, kind: input, shape index: {}]   ;;  %s3125_s3 = inlined_call_operand.hbm [shape: bf16[128,128], index: 3, kind: input, shape index: {}]   ;;  %s3126_s4 = inlined_call_operand.hbm [shape: f32[1,128], index: 4, kind: input, shape index: {}]   ;;  %s3127_s5 = inlined_call_operand.hbm [shape: bf16[128,128], index: 5, kind: input, shape index: {}]   ;;  %s3128_s6 = inlined_call_operand.hbm [shape: f32[1,128], index: 6, kind: input, shape index: {}]   ;;  %s3129_s7 = inlined_call_operand.hbm [shape: bf16[128,128], index: 7, kind: input, shape index: {}]   ;;  %s3130_s8 = inlined_call_operand.hbm [shape: f32[1,128], index: 8, kind: input, shape index: {}]   ;;  %s3131_s9 = inlined_call_operand.hbm [shape: bf16[128,128], index: 9, kind: input, shape index: {}]   ;;  %s3132_s10 = inlined_call_operand.hbm [shape: f32[1,128], index: 10, kind: input, shape index: {}]   ;;  %s3133_s11 = inlined_call_operand.hbm [shape: bf16[128,128], index: 11, kind: input, shape index: {}]   ;;  %s3134_s12 = inlined_call_operand.hbm [shape: f32[1,128], index: 12, kind: input, shape index: {}]   ;;  %s3135_s13 = inlined_call_operand.hbm [shape: bf16[16,2048], index: 13, kind: input, shape index: {}]   ;;  %s3136_s14 = inlined_call_operand.hbm [shape: f32[1,128], index: 14, kind: input, shape index: {}]   ;;  %s3137_s15 = inlined_call_operand.vmem [shape: bf16[128,128], index: 15, kind: input, shape index: {}]   ;;  %s3138_s16 = inlined_call_operand.hbm [shape: f32[1,128], index: 16, kind: input, shape index: {}]   ;;  %s3139_s17 = inlined_call_operand.hbm [shape: bf16[128,128], index: 17, kind: input, shape index: {}]   ;;  %s3140_s18 = inlined_call_operand.hbm [shape: f32[1,128], index: 18, kind: input, shape index: {}]   ;;  %s3141_s19 = inlined_call_operand.vmem [shape: f32[8,384], index: 19, kind: output, shape index: {}]  }
   0x1   :  { %3149 = sst [smem:[#allocation40_spill]] %s3122_s0 }
   0x2   :  { %3150 = sst [smem:[#allocation41_spill]] %s3123_s1 }
   0x3   :  { %3151 = sst [smem:[#allocation42_spill]] %s3124_s2 }
   0x4   :  { %3152 = sst [smem:[#allocation43_spill]] %s3125_s3 }
   0x5   :  { %3153 = sst [smem:[#allocation44_spill]] %s3137_s15 }
   0x6   :  { %3154 = sst [smem:[#allocation45_spill]] %s3140_s18 }
   0x7   :  { %3155 = sst [smem:[#allocation46_spill]] %s3141_s19 }
   0x8   :  { %24 = vsyncpa [#allocation3], 0 }
   0x9   :  { %25 = vsyncpa [#allocation5], 0 }
   0xa   :  { %26 = vsyncpa [#allocation8], 0 }
   0xb   :  { %27 = vsyncpa [#allocation11], 0 }
   0xc   :  { %28 = vsyncpa [#allocation14], 0 }
   0xd   :  { %29 = vsyncpa [#allocation17], 0 }
   0xe   :  { %30 = vsyncpa [#allocation20], 0 }
   0xf   :  { %31 = vsyncpa [#allocation23], 0 }
  0x10   :  { %32 = vsyncpa [#allocation26], 0 }
  0x11   :  { %33 = vsyncpa [#allocation29], 0  ;;  %s2536_s0 = smov [#allocation4]   ;;  %s3156_s1 = sld [smem:[#allocation41_spill]] }
  0x12   :  { %s49_s30 = sshll.u32 %s2536_s0, 4  ;;  %s50_s30 = int_to_ptr.vmem [resolvable:$true] %s49_s30 }
  0x17   :  { %s2120_s22 = scalar_lea.hbm %s3156_s1, 128 }
  0x18   :  { %p2121_p0 = scmp.ne.s32.totalorder %s3156_s1, %s2120_s22  ;;  %p2124_p1 = scmp.lt.u32.totalorder %s2120_s22, %s3156_s1 }
  0x1a   :  { %p2126_p2 = pnand %p2124_p1, %p2121_p0 }
  0x1c   :  { %2129 = shalt.err (!%p2126_p2)
}
  0x1d   :  { %s2130_s3 = scalar_lea.vmem %s50_s30, 128  ;;  %p2135_p4 = scmp.lt.s32.totalorder %s50_s30, %s50_s30 }
  0x1e   :  { %p2131_p3 = scmp.ne.s32.totalorder %s50_s30, %s2130_s3  ;;  %p2136_p5 = scmp.lt.s32.totalorder %s2130_s3, %s2130_s3 }
  0x20   :  { %p2137_p6 = por %p2136_p5, %p2135_p4 }
  0x22   :  { %p2138_p7 = pnand %p2137_p6, %p2131_p3 }
  0x24   :  { %2141 = shalt.err (!%p2138_p7)
}
  0x25   :  { %s2537_s26 = smov 64   ;;  %s2538_s27 = smov 4  }
  0x26   :  { %55 = dma.hbm_to_vmem [thread:$0]  %s3156_s1, 128, %s50_s30, [#allocation5], %s2537_s26, %s2537_s26, %s2538_s27  }
  0x27   :  { %s2539_s0 = smov [#allocation7]   ;;  %s2540_s21 = smov [#allocation10]  }
  0x28   :  { %s71_s20 = sshll.u32 %s2539_s0, 4  ;;  %s93_s22 = sshll.u32 %s2540_s21, 4  ;;  %s72_s20 = int_to_ptr.vmem [resolvable:$true] %s71_s20  ;;  %s94_s22 = int_to_ptr.vmem [resolvable:$true] %s93_s22 }
  0x29   :  { %s3157_s24 = sld [smem:[#allocation43_spill]] }
  0x2f   :  { %s2142_s25 = scalar_lea.hbm %s3157_s24, 1024 }
  0x30   :  { %p2143_p8 = scmp.ne.s32.totalorder %s3157_s24, %s2142_s25  ;;  %p2146_p9 = scmp.lt.u32.totalorder %s2142_s25, %s3157_s24 }
  0x32   :  { %p2148_p10 = pnand %p2146_p9, %p2143_p8 }
  0x34   :  { %2151 = shalt.err (!%p2148_p10)
}
  0x35   :  { %s2152_s30 = scalar_lea.vmem %s72_s20, 1024  ;;  %p2157_p12 = scmp.lt.s32.totalorder %s72_s20, %s72_s20 }
  0x36   :  { %p2153_p11 = scmp.ne.s32.totalorder %s72_s20, %s2152_s30  ;;  %p2158_p13 = scmp.lt.s32.totalorder %s2152_s30, %s2152_s30 }
  0x38   :  { %p2159_p0 = por %p2158_p13, %p2157_p12 }
  0x3a   :  { %p2160_p1 = pnand %p2159_p0, %p2153_p11 }
  0x3c   :  { %2163 = shalt.err (!%p2160_p1)
}
  0x3d   :  { %77 = dma.hbm_to_vmem [thread:$0]  %s3157_s24, 1024, %s72_s20, [#allocation8], %s2537_s26, %s2537_s26, %s2538_s27  }
  0x3e   :  { %s2164_s19 = scalar_lea.hbm %s3127_s5, 1024 }
  0x3f   :  { %p2165_p2 = scmp.ne.s32.totalorder %s3127_s5, %s2164_s19  ;;  %p2168_p3 = scmp.lt.u32.totalorder %s2164_s19, %s3127_s5 }
  0x41   :  { %p2170_p4 = pnand %p2168_p3, %p2165_p2 }
  0x43   :  { %2173 = shalt.err (!%p2170_p4)
}
  0x44   :  { %s2174_s23 = scalar_lea.vmem %s94_s22, 1024  ;;  %p2179_p6 = scmp.lt.s32.totalorder %s94_s22, %s94_s22 }
  0x45   :  { %p2175_p5 = scmp.ne.s32.totalorder %s94_s22, %s2174_s23  ;;  %p2180_p7 = scmp.lt.s32.totalorder %s2174_s23, %s2174_s23 }
  0x47   :  { %p2181_p8 = por %p2180_p7, %p2179_p6 }
  0x49   :  { %p2182_p9 = pnand %p2181_p8, %p2175_p5 }
  0x4b   :  { %2185 = shalt.err (!%p2182_p9)
}
  0x4c   :  { %99 = dma.hbm_to_vmem [thread:$0]  %s3127_s5, 1024, %s94_s22, [#allocation11], %s2537_s26, %s2537_s26, %s2538_s27  }
  0x4d   :  { %s2541_s25 = smov [#allocation13]   ;;  %s2542_s30 = smov [#allocation16]  }
  0x4e   :  { %s115_s3 = sshll.u32 %s2541_s25, 4  ;;  %s137_s1 = sshll.u32 %s2542_s30, 4  ;;  %s116_s3 = int_to_ptr.vmem [resolvable:$true] %s115_s3  ;;  %s138_s1 = int_to_ptr.vmem [resolvable:$true] %s137_s1 }
  0x4f   :  { %s2186_s18 = scalar_lea.hbm %s3129_s7, 1024 }
  0x50   :  { %p2187_p10 = scmp.ne.s32.totalorder %s3129_s7, %s2186_s18  ;;  %p2190_p11 = scmp.lt.u32.totalorder %s2186_s18, %s3129_s7 }
  0x52   :  { %p2192_p12 = pnand %p2190_p11, %p2187_p10 }
  0x54   :  { %2195 = shalt.err (!%p2192_p12)
}
  0x55   :  { %s2196_s5 = scalar_lea.vmem %s116_s3, 1024  ;;  %p2201_p0 = scmp.lt.s32.totalorder %s116_s3, %s116_s3 }
  0x56   :  { %p2197_p13 = scmp.ne.s32.totalorder %s116_s3, %s2196_s5  ;;  %p2202_p1 = scmp.lt.s32.totalorder %s2196_s5, %s2196_s5 }
  0x58   :  { %p2203_p2 = por %p2202_p1, %p2201_p0 }
  0x5a   :  { %p2204_p3 = pnand %p2203_p2, %p2197_p13 }
  0x5c   :  { %2207 = shalt.err (!%p2204_p3)
}
  0x5d   :  { %121 = dma.hbm_to_vmem [thread:$0]  %s3129_s7, 1024, %s116_s3, [#allocation14], %s2537_s26, %s2537_s26, %s2538_s27  }
  0x5e   :  { %s2208_s24 = scalar_lea.hbm %s3131_s9, 1024 }
  0x5f   :  { %p2209_p4 = scmp.ne.s32.totalorder %s3131_s9, %s2208_s24  ;;  %p2212_p5 = scmp.lt.u32.totalorder %s2208_s24, %s3131_s9 }
  0x61   :  { %p2214_p6 = pnand %p2212_p5, %p2209_p4 }
  0x63   :  { %2217 = shalt.err (!%p2214_p6)
}
  0x64   :  { %s2218_s18 = scalar_lea.vmem %s138_s1, 1024  ;;  %p2223_p8 = scmp.lt.s32.totalorder %s138_s1, %s138_s1 }
  0x65   :  { %p2219_p7 = scmp.ne.s32.totalorder %s138_s1, %s2218_s18  ;;  %p2224_p9 = scmp.lt.s32.totalorder %s2218_s18, %s2218_s18 }
  0x67   :  { %p2225_p10 = por %p2224_p9, %p2223_p8 }
  0x69   :  { %p2226_p11 = pnand %p2225_p10, %p2219_p7 }
  0x6b   :  { %2229 = shalt.err (!%p2226_p11)
}
  0x6c   :  { %143 = dma.hbm_to_vmem [thread:$0]  %s3131_s9, 1024, %s138_s1, [#allocation17], %s2537_s26, %s2537_s26, %s2538_s27  }
  0x6d   :  { %s2543_s19 = smov [#allocation19]   ;;  %s2544_s0 = smov [#allocation22]  }
  0x6e   :  { %s159_s29 = sshll.u32 %s2543_s19, 4  ;;  %s181_s21 = sshll.u32 %s2544_s0, 4  ;;  %s160_s29 = int_to_ptr.vmem [resolvable:$true] %s159_s29  ;;  %s182_s21 = int_to_ptr.vmem [resolvable:$true] %s181_s21 }
  0x6f   :  { %s2230_s2 = scalar_lea.hbm %s3133_s11, 1024 }
  0x70   :  { %p2231_p12 = scmp.ne.s32.totalorder %s3133_s11, %s2230_s2  ;;  %p2234_p13 = scmp.lt.u32.totalorder %s2230_s2, %s3133_s11 }
  0x72   :  { %p2236_p0 = pnand %p2234_p13, %p2231_p12 }
  0x74   :  { %2239 = shalt.err (!%p2236_p0)
}
  0x75   :  { %s2240_s9 = scalar_lea.vmem %s160_s29, 1024  ;;  %p2245_p2 = scmp.lt.s32.totalorder %s160_s29, %s160_s29 }
  0x76   :  { %p2241_p1 = scmp.ne.s32.totalorder %s160_s29, %s2240_s9  ;;  %p2246_p3 = scmp.lt.s32.totalorder %s2240_s9, %s2240_s9 }
  0x78   :  { %p2247_p4 = por %p2246_p3, %p2245_p2 }
  0x7a   :  { %p2248_p5 = pnand %p2247_p4, %p2241_p1 }
  0x7c   :  { %2251 = shalt.err (!%p2248_p5)
}
  0x7d   :  { %165 = dma.hbm_to_vmem [thread:$0]  %s3133_s11, 1024, %s160_s29, [#allocation20], %s2537_s26, %s2537_s26, %s2538_s27  }
  0x7e   :  { %s2252_s18 = scalar_lea.hbm %s3135_s13, 2048 }
  0x7f   :  { %p2253_p6 = scmp.ne.s32.totalorder %s3135_s13, %s2252_s18  ;;  %p2256_p7 = scmp.lt.u32.totalorder %s2252_s18, %s3135_s13 }
  0x81   :  { %p2258_p8 = pnand %p2256_p7, %p2253_p6 }
  0x83   :  { %2261 = shalt.err (!%p2258_p8)
}
  0x84   :  { %s2262_s5 = scalar_lea.vmem %s182_s21, 2048  ;;  %p2267_p10 = scmp.lt.s32.totalorder %s182_s21, %s182_s21 }
  0x85   :  { %p2263_p9 = scmp.ne.s32.totalorder %s182_s21, %s2262_s5  ;;  %p2268_p11 = scmp.lt.s32.totalorder %s2262_s5, %s2262_s5 }
  0x87   :  { %p2269_p12 = por %p2268_p11, %p2267_p10 }
  0x89   :  { %p2270_p13 = pnand %p2269_p12, %p2263_p9 }
  0x8b   :  { %2273 = shalt.err (!%p2270_p13)
}
  0x8c   :  { %s2545_s11 = smov 1024   ;;  %s2546_s2 = smov [#allocation25]  }
  0x8d   :  { %187 = dma.hbm_to_vmem [thread:$0]  %s3135_s13, 2048, %s182_s21, [#allocation23], %s2545_s11, %s2545_s11, %s2537_s26  }
  0x8e   :  { %s206_s23 = sshll.u32 %s2546_s2, 4  ;;  %s2547_s20 = smov [#allocation2]   ;;  %s207_s23 = int_to_ptr.vmem [resolvable:$true] %s206_s23 }
  0x8f   :  { %s40_s24 = sshll.u32 %s2547_s20, 4  ;;  %s2274_s1 = scalar_lea.hbm %s3138_s16, 16  ;;  %s41_s24 = int_to_ptr.vmem [resolvable:$true] %s40_s24 }
  0x90   :  { %p2275_p0 = scmp.ne.s32.totalorder %s3138_s16, %s2274_s1  ;;  %p2278_p1 = scmp.lt.u32.totalorder %s2274_s1, %s3138_s16 }
  0x92   :  { %p2280_p2 = pnand %p2278_p1, %p2275_p0 }
  0x94   :  { %2283 = shalt.err (!%p2280_p2)
}
  0x95   :  { %s2284_s13 = scalar_lea.vmem %s207_s23, 16  ;;  %s2288_s21 = scalar_lea.vmem %s207_s23, 32 }
  0x96   :  { %p2285_p3 = scmp.ne.s32.totalorder %s207_s23, %s2284_s13  ;;  %p2289_p4 = scmp.lt.s32.totalorder %s207_s23, %s207_s23 }
  0x97   :  { %p2290_p5 = scmp.lt.s32.totalorder %s2288_s21, %s2284_s13 }
  0x99   :  { %p2291_p6 = por %p2290_p5, %p2289_p4 }
  0x9b   :  { %p2292_p7 = pnand %p2291_p6, %p2285_p3 }
  0x9d   :  { %2295 = shalt.err (!%p2292_p7)
}
  0x9e   :  { %209 = dma.hbm_to_vmem [thread:$0]  %s3138_s16, 16, %s207_s23, [#allocation26]  }
  0x9f   :  { %s3158_s5 = sld [smem:[#allocation40_spill]] }
  0xa5   :  { %s2296_s11 = scalar_lea.hbm %s3158_s5, 128 }
  0xa6   :  { %p2297_p8 = scmp.ne.s32.totalorder %s3158_s5, %s2296_s11  ;;  %p2300_p9 = scmp.lt.u32.totalorder %s2296_s11, %s3158_s5 }
  0xa8   :  { %p2302_p10 = pnand %p2300_p9, %p2297_p8 }
  0xaa   :  { %2305 = shalt.err (!%p2302_p10)
}
  0xab   :  { %s2306_s25 = scalar_lea.vmem %s41_s24, 128  ;;  %p2311_p12 = scmp.lt.s32.totalorder %s41_s24, %s41_s24 }
  0xac   :  { %p2307_p11 = scmp.ne.s32.totalorder %s41_s24, %s2306_s25  ;;  %p2312_p13 = scmp.lt.s32.totalorder %s2306_s25, %s2306_s25 }
  0xae   :  { %p2313_p0 = por %p2312_p13, %p2311_p12 }
  0xb0   :  { %p2314_p1 = pnand %p2313_p0, %p2307_p11 }
  0xb2   :  { %2317 = shalt.err (!%p2314_p1)
}
  0xb3   :  { %43 = dma.hbm_to_vmem [thread:$0]  %s3158_s5, 128, %s41_s24, [#allocation3]  }
  0xb4   :  { %s2548_s9 = smov [#allocation6]   ;;  %s2549_s30 = smov [#allocation9]  }
  0xb5   :  { %s62_s1 = sshll.u32 %s2548_s9, 4  ;;  %s84_s28 = sshll.u32 %s2549_s30, 4  ;;  %s63_s1 = int_to_ptr.vmem [resolvable:$true] %s62_s1  ;;  %s85_s28 = int_to_ptr.vmem [resolvable:$true] %s84_s28 }
  0xb6   :  { %s3159_s13 = sld [smem:[#allocation42_spill]] }
  0xbc   :  { %s2318_s21 = scalar_lea.hbm %s3159_s13, 16 }
  0xbd   :  { %p2319_p2 = scmp.ne.s32.totalorder %s3159_s13, %s2318_s21  ;;  %p2322_p3 = scmp.lt.u32.totalorder %s2318_s21, %s3159_s13 }
  0xbf   :  { %p2324_p4 = pnand %p2322_p3, %p2319_p2 }
  0xc1   :  { %2327 = shalt.err (!%p2324_p4)
}
  0xc2   :  { %s2328_s24 = scalar_lea.vmem %s63_s1, 16  ;;  %s2332_s5 = scalar_lea.vmem %s63_s1, 32 }
  0xc3   :  { %p2329_p5 = scmp.ne.s32.totalorder %s63_s1, %s2328_s24  ;;  %p2333_p6 = scmp.lt.s32.totalorder %s63_s1, %s63_s1 }
  0xc4   :  { %p2334_p7 = scmp.lt.s32.totalorder %s2332_s5, %s2328_s24 }
  0xc6   :  { %p2335_p8 = por %p2334_p7, %p2333_p6 }
  0xc8   :  { %p2336_p9 = pnand %p2335_p8, %p2329_p5 }
  0xca   :  { %2339 = shalt.err (!%p2336_p9)
}
  0xcb   :  { %65 = dma.hbm_to_vmem [thread:$0]  %s3159_s13, 16, %s63_s1, [#allocation5]  }
  0xcc   :  { %s2340_s20 = scalar_lea.hbm %s3126_s4, 16 }
  0xcd   :  { %p2341_p10 = scmp.ne.s32.totalorder %s3126_s4, %s2340_s20  ;;  %p2344_p11 = scmp.lt.u32.totalorder %s2340_s20, %s3126_s4 }
  0xcf   :  { %p2346_p12 = pnand %p2344_p11, %p2341_p10 }
  0xd1   :  { %2349 = shalt.err (!%p2346_p12)
}
  0xd2   :  { %s2350_s30 = scalar_lea.vmem %s85_s28, 16  ;;  %s2354_s15 = scalar_lea.vmem %s85_s28, 32 }
  0xd3   :  { %p2351_p13 = scmp.ne.s32.totalorder %s85_s28, %s2350_s30  ;;  %p2355_p0 = scmp.lt.s32.totalorder %s85_s28, %s85_s28 }
  0xd4   :  { %p2356_p1 = scmp.lt.s32.totalorder %s2354_s15, %s2350_s30 }
  0xd6   :  { %p2357_p2 = por %p2356_p1, %p2355_p0 }
  0xd8   :  { %p2358_p3 = pnand %p2357_p2, %p2351_p13 }
  0xda   :  { %2361 = shalt.err (!%p2358_p3)
}
  0xdb   :  { %87 = dma.hbm_to_vmem [thread:$0]  %s3126_s4, 16, %s85_s28, [#allocation8]  }
  0xdc   :  { %s2550_s13 = smov [#allocation12]   ;;  %s2551_s7 = smov [#allocation15]  }
  0xdd   :  { %s106_s21 = sshll.u32 %s2550_s13, 4  ;;  %s128_s3 = sshll.u32 %s2551_s7, 4  ;;  %s107_s21 = int_to_ptr.vmem [resolvable:$true] %s106_s21  ;;  %s129_s3 = int_to_ptr.vmem [resolvable:$true] %s128_s3 }
  0xde   :  { %s2362_s24 = scalar_lea.hbm %s3128_s6, 16 }
  0xdf   :  { %p2363_p4 = scmp.ne.s32.totalorder %s3128_s6, %s2362_s24  ;;  %p2366_p5 = scmp.lt.u32.totalorder %s2362_s24, %s3128_s6 }
  0xe1   :  { %p2368_p6 = pnand %p2366_p5, %p2363_p4 }
  0xe3   :  { %2371 = shalt.err (!%p2368_p6)
}
  0xe4   :  { %s2372_s4 = scalar_lea.vmem %s107_s21, 16  ;;  %s2376_s28 = scalar_lea.vmem %s107_s21, 32 }
  0xe5   :  { %p2373_p7 = scmp.ne.s32.totalorder %s107_s21, %s2372_s4  ;;  %p2377_p8 = scmp.lt.s32.totalorder %s107_s21, %s107_s21 }
  0xe6   :  { %p2378_p9 = scmp.lt.s32.totalorder %s2376_s28, %s2372_s4 }
  0xe8   :  { %p2379_p10 = por %p2378_p9, %p2377_p8 }
  0xea   :  { %p2380_p11 = pnand %p2379_p10, %p2373_p7 }
  0xec   :  { %2383 = shalt.err (!%p2380_p11)
}
  0xed   :  { %109 = dma.hbm_to_vmem [thread:$0]  %s3128_s6, 16, %s107_s21, [#allocation11]  }
  0xee   :  { %s2384_s23 = scalar_lea.hbm %s3130_s8, 16 }
  0xef   :  { %p2385_p12 = scmp.ne.s32.totalorder %s3130_s8, %s2384_s23  ;;  %p2388_p13 = scmp.lt.u32.totalorder %s2384_s23, %s3130_s8 }
  0xf1   :  { %p2390_p0 = pnand %p2388_p13, %p2385_p12 }
  0xf3   :  { %2393 = shalt.err (!%p2390_p0)
}
  0xf4   :  { %s2394_s18 = scalar_lea.vmem %s129_s3, 16  ;;  %s2398_s13 = scalar_lea.vmem %s129_s3, 32 }
  0xf5   :  { %p2395_p1 = scmp.ne.s32.totalorder %s129_s3, %s2394_s18  ;;  %p2399_p2 = scmp.lt.s32.totalorder %s129_s3, %s129_s3 }
  0xf6   :  { %p2400_p3 = scmp.lt.s32.totalorder %s2398_s13, %s2394_s18 }
  0xf8   :  { %p2401_p4 = por %p2400_p3, %p2399_p2 }
  0xfa   :  { %p2402_p5 = pnand %p2401_p4, %p2395_p1 }
  0xfc   :  { %2405 = shalt.err (!%p2402_p5)
}
  0xfd   :  { %131 = dma.hbm_to_vmem [thread:$0]  %s3130_s8, 16, %s129_s3, [#allocation14]  }
  0xfe   :  { %s2552_s7 = smov [#allocation18]   ;;  %s2553_s0 = smov [#allocation21]  }
  0xff   :  { %s150_s19 = sshll.u32 %s2552_s7, 4  ;;  %s172_s24 = sshll.u32 %s2553_s0, 4  ;;  %s151_s19 = int_to_ptr.vmem [resolvable:$true] %s150_s19  ;;  %s173_s24 = int_to_ptr.vmem [resolvable:$true] %s172_s24 }
 0x100   :  { %s2406_s29 = scalar_lea.hbm %s3132_s10, 16 }
 0x101   :  { %p2407_p6 = scmp.ne.s32.totalorder %s3132_s10, %s2406_s29  ;;  %p2410_p7 = scmp.lt.u32.totalorder %s2406_s29, %s3132_s10 }
 0x103   :  { %p2412_p8 = pnand %p2410_p7, %p2407_p6 }
 0x105   :  { %2415 = shalt.err (!%p2412_p8)
}
 0x106   :  { %s2416_s8 = scalar_lea.vmem %s151_s19, 16  ;;  %s2420_s3 = scalar_lea.vmem %s151_s19, 32 }
 0x107   :  { %p2417_p9 = scmp.ne.s32.totalorder %s151_s19, %s2416_s8  ;;  %p2421_p10 = scmp.lt.s32.totalorder %s151_s19, %s151_s19 }
 0x108   :  { %p2422_p11 = scmp.lt.s32.totalorder %s2420_s3, %s2416_s8 }
 0x10a   :  { %p2423_p12 = por %p2422_p11, %p2421_p10 }
 0x10c   :  { %p2424_p13 = pnand %p2423_p12, %p2417_p9 }
 0x10e   :  { %2427 = shalt.err (!%p2424_p13)
}
 0x10f   :  { %153 = dma.hbm_to_vmem [thread:$0]  %s3132_s10, 16, %s151_s19, [#allocation17]  }
 0x110   :  { %s2428_s9 = scalar_lea.hbm %s3134_s12, 16 }
 0x111   :  { %p2429_p0 = scmp.ne.s32.totalorder %s3134_s12, %s2428_s9  ;;  %p2432_p1 = scmp.lt.u32.totalorder %s2428_s9, %s3134_s12 }
 0x113   :  { %p2434_p2 = pnand %p2432_p1, %p2429_p0 }
 0x115   :  { %2437 = shalt.err (!%p2434_p2)
}
 0x116   :  { %s2438_s13 = scalar_lea.vmem %s173_s24, 16  ;;  %s2442_s6 = scalar_lea.vmem %s173_s24, 32 }
 0x117   :  { %p2439_p3 = scmp.ne.s32.totalorder %s173_s24, %s2438_s13  ;;  %p2443_p4 = scmp.lt.s32.totalorder %s173_s24, %s173_s24 }
 0x118   :  { %p2444_p5 = scmp.lt.s32.totalorder %s2442_s6, %s2438_s13 }
 0x11a   :  { %p2445_p6 = por %p2444_p5, %p2443_p4 }
 0x11c   :  { %p2446_p7 = pnand %p2445_p6, %p2439_p3 }
 0x11e   :  { %2449 = shalt.err (!%p2446_p7)
}
 0x11f   :  { %175 = dma.hbm_to_vmem [thread:$0]  %s3134_s12, 16, %s173_s24, [#allocation20]  }
 0x120   :  { %s2554_s7 = smov [#allocation24]   ;;  %s2555_s0 = smov [#allocation27]  }
 0x121   :  { %s194_s19 = sshll.u32 %s2554_s7, 4  ;;  %s215_s5 = sshll.u32 %s2555_s0, 4  ;;  %s195_s19 = int_to_ptr.vmem [resolvable:$true] %s194_s19  ;;  %s2874_s5 = int_to_ptr.vmem [resolvable:$true] %s215_s5 }
 0x122   :  { %s2450_s22 = scalar_lea.hbm %s3136_s14, 16 }
 0x123   :  { %p2451_p8 = scmp.ne.s32.totalorder %s3136_s14, %s2450_s22  ;;  %p2454_p9 = scmp.lt.u32.totalorder %s2450_s22, %s3136_s14 }
 0x125   :  { %p2456_p10 = pnand %p2454_p9, %p2451_p8 }
 0x127   :  { %2459 = shalt.err (!%p2456_p10)
}
 0x128   :  { %s2460_s12 = scalar_lea.vmem %s195_s19, 16  ;;  %s2464_s24 = scalar_lea.vmem %s195_s19, 32 }
 0x129   :  { %p2461_p11 = scmp.ne.s32.totalorder %s195_s19, %s2460_s12  ;;  %p2465_p12 = scmp.lt.s32.totalorder %s195_s19, %s195_s19 }
 0x12a   :  { %p2466_p13 = scmp.lt.s32.totalorder %s2464_s24, %s2460_s12 }
 0x12c   :  { %p2467_p0 = por %p2466_p13, %p2465_p12 }
 0x12e   :  { %p2468_p1 = pnand %p2467_p0, %p2461_p11 }
 0x130   :  { %2471 = shalt.err (!%p2468_p1)
}
 0x131   :  { %197 = dma.hbm_to_vmem [thread:$0]  %s3136_s14, 16, %s195_s19, [#allocation23]  }
 0x132   :  { %s2472_s23 = scalar_lea.hbm %s3139_s17, 1024 }
 0x133   :  { %p2473_p2 = scmp.ne.s32.totalorder %s3139_s17, %s2472_s23  ;;  %p2476_p3 = scmp.lt.u32.totalorder %s2472_s23, %s3139_s17 }
 0x135   :  { %p2478_p4 = pnand %p2476_p3, %p2473_p2 }
 0x137   :  { %2481 = shalt.err (!%p2478_p4)
}
 0x138   :  { %s2482_s18 = scalar_lea.vmem %s2874_s5, 1024  ;;  %p2487_p6 = scmp.lt.s32.totalorder %s2874_s5, %s2874_s5 }
 0x139   :  { %p2483_p5 = scmp.ne.s32.totalorder %s2874_s5, %s2482_s18  ;;  %p2488_p7 = scmp.lt.s32.totalorder %s2482_s18, %s2482_s18 }
 0x13b   :  { %p2489_p8 = por %p2488_p7, %p2487_p6 }
 0x13d   :  { %p2490_p9 = pnand %p2489_p8, %p2483_p5 }
 0x13f   :  { %2493 = shalt.err (!%p2490_p9)
}
 0x140   :  { %221 = dma.hbm_to_vmem [thread:$0]  %s3139_s17, 1024, %s2874_s5, [#allocation26], %s2537_s26, %s2537_s26, %s2538_s27  }
 0x141   :  { %s2556_s6 = smov [#allocation28]   ;;  %s3160_s19 = sld [smem:[#allocation45_spill]] }
 0x142   :  { %s228_s10 = sshll.u32 %s2556_s6, 4  ;;  %s229_s10 = int_to_ptr.vmem [resolvable:$true] %s228_s10 }
 0x147   :  { %s2494_s0 = scalar_lea.hbm %s3160_s19, 16 }
 0x148   :  { %p2495_p10 = scmp.ne.s32.totalorder %s3160_s19, %s2494_s0  ;;  %p2498_p11 = scmp.lt.u32.totalorder %s2494_s0, %s3160_s19 }
 0x14a   :  { %p2500_p12 = pnand %p2498_p11, %p2495_p10 }
 0x14c   :  { %2503 = shalt.err (!%p2500_p12)
}
 0x14d   :  { %s2504_s28 = scalar_lea.vmem %s229_s10, 16  ;;  %s2508_s17 = scalar_lea.vmem %s229_s10, 32 }
 0x14e   :  { %p2505_p13 = scmp.ne.s32.totalorder %s229_s10, %s2504_s28  ;;  %p2509_p0 = scmp.lt.s32.totalorder %s229_s10, %s229_s10 }
 0x14f   :  { %p2510_p1 = scmp.lt.s32.totalorder %s2508_s17, %s2504_s28 }
 0x151   :  { %p2511_p2 = por %p2510_p1, %p2509_p0 }
 0x153   :  { %p2512_p3 = pnand %p2511_p2, %p2505_p13 }
 0x155   :  { %2515 = shalt.err (!%p2512_p3)
}
 0x156   :  { %231 = dma.hbm_to_vmem [thread:$0]  %s3160_s19, 16, %s229_s10, [#allocation29]  }
 0x157   :  { %2516 = dma.done.wait [#allocation3], 128  }
 0x158   :  { %2517 = vsyncadd [#allocation3], 4294967168 }
 0x159   :  { %2518 = dma.done.wait [#allocation5], 144  }
 0x15a   :  { %2519 = vsyncadd [#allocation5], 4294967152 }
 0x15b   :  { %2520 = dma.done.wait [#allocation8], 1040  }
 0x15c   :  { %2521 = vsyncadd [#allocation8], 4294966256 }
 0x15d   :  { %2522 = dma.done.wait [#allocation11], 1040  }
 0x15e   :  { %2523 = vsyncadd [#allocation11], 4294966256 }
 0x15f   :  { %2524 = dma.done.wait [#allocation14], 1040  }
 0x160   :  { %2525 = vsyncadd [#allocation14], 4294966256 }
 0x161   :  { %2526 = dma.done.wait [#allocation17], 1040  }
 0x162   :  { %2527 = vsyncadd [#allocation17], 4294966256 }
 0x163   :  { %2528 = dma.done.wait [#allocation20], 1040  }
 0x164   :  { %2529 = vsyncadd [#allocation20], 4294966256 }
 0x165   :  { %2530 = dma.done.wait [#allocation23], 2064  }
 0x166   :  { %2531 = vsyncadd [#allocation23], 4294965232 }
 0x167   :  { %2532 = dma.done.wait [#allocation26], 1040  }
 0x168   :  { %2533 = vsyncadd [#allocation26], 4294966256 }
 0x169   :  { %2534 = dma.done.wait [#allocation29], 16  }
 0x16a   :  { %2535 = vsyncadd [#allocation29], 4294967280  ;;  %v2557_v0 = vmov 0.0   ;;  %vm2558_vm0 = vmmov 0   ;;  %v2055_v1 = vld [vmem:[#allocation4] sm:$0xff]   ;;  %v287_v2 = vld [vmem:[#allocation2] sm:$0xff] }
 0x16b   :  { %1853 = vmatprep.subr.bf16.mxu0 %v2557_v0  ;;  %1855 = vmatprep.mubr.msk.bf16.mxu0 %vm2558_vm0, %v2557_v0  ;;  %v2926_v3 = vpack.c.bf16 %v287_v2, %v287_v2  ;;  %vm304_vm1 = vcmask 130048   ;;  %v2056_v4 = vld [vmem:[#allocation7] sm:$0xff]   ;;  %v2057_v5 = vld [vmem:[#allocation7 + $0x8] sm:$0xff]   ;;  %v2058_v6 = vld [vmem:[#allocation7 + $0x10] sm:$0xff]   ;;  %s3161_s8 = sld [smem:[#allocation46_spill]]  ;;  %s3162_s25 = sld [smem:[#allocation44_spill]] }
 0x16c   :  { %1859 = vmatprep.subr.bf16.mxu1 %v2557_v0  ;;  %1875 = vmatprep.mubr.msk.bf16.mxu1 %vm2558_vm0, %v2557_v0  ;;  %v2059_v7 = vld [vmem:[#allocation7 + $0x18] sm:$0xff]   ;;  %v2060_v8 = vld [vmem:[#allocation7 + $0x20] sm:$0xff]   ;;  %v2061_v9 = vld [vmem:[#allocation7 + $0x28] sm:$0xff]  }
 0x16d   :  { %1854 = vmatpush3.bf16.msra.mxu0 %v2055_v1  ;;  %1860 = vmatpush3.bf16.msra.mxu1 %v2056_v4  ;;  %v2062_v10 = vld [vmem:[#allocation7 + $0x30] sm:$0xff]   ;;  %v2063_v11 = vld [vmem:[#allocation7 + $0x38] sm:$0xff]   ;;  %v2064_v12 = vld [vmem:[#allocation10] sm:$0xff]  }
 0x16e   :  { %1879 = vmatprep.subr.bf16.mxu0 %v2557_v0  ;;  %1861 = vmatprep.subr.bf16.mxu1 %v2557_v0  ;;  %v2065_v13 = vld [vmem:[#allocation10 + $0x8] sm:$0xff]   ;;  %v2066_v14 = vld [vmem:[#allocation10 + $0x10] sm:$0xff]   ;;  %v2067_v15 = vld [vmem:[#allocation10 + $0x18] sm:$0xff]  }
 0x16f   :  { %v2068_v16 = vld [vmem:[#allocation10 + $0x20] sm:$0xff]   ;;  %v2069_v17 = vld [vmem:[#allocation10 + $0x28] sm:$0xff]   ;;  %v1695_v18 = vld [vmem:[#allocation6] ss:$0 sm:$0xff] }
 0x170   :  { %1856 = vmatmul.mubr.msk.bf16.vlgmr.msra.gmra.mrb[0].mxu0 %vm304_vm1, %v2926_v3  ;;  %v2070_v26 = vld [vmem:[#allocation10 + $0x30] sm:$0xff]   ;;  %v2071_v27 = vld [vmem:[#allocation10 + $0x38] sm:$0xff]   ;;  %v2072_v28 = vld [vmem:[#allocation13] sm:$0xff]  }
 0x171   :  { %1895 = vmatprep.mubr.msk.bf16.mxu0 %vm2558_vm0, %v2557_v0  ;;  %1862 = vmatpush3.bf16.msra.mxu1 %v2057_v5  ;;  %v2073_v29 = vld [vmem:[#allocation13 + $0x8] sm:$0xff]   ;;  %v2074_v30 = vld [vmem:[#allocation13 + $0x10] sm:$0xff]   ;;  %v2075_v31 = vld [vmem:[#allocation13 + $0x18] sm:$0xff]  }
 0x172   :  { %1863 = vmatprep.subr.bf16.mxu1 %v2557_v0  ;;  %1880 = vmatpush3.bf16.msra.mxu0 %v2064_v12  ;;  %v2076_v32 = vld [vmem:[#allocation13 + $0x20] sm:$0xff]   ;;  %v2077_v33 = vld [vmem:[#allocation13 + $0x28] sm:$0xff]   ;;  %v1698_v34 = vld [vmem:[#allocation9] ss:$0 sm:$0xff] }
 0x173   :  { %1881 = vmatprep.subr.bf16.mxu0 %v2557_v0  ;;  %v2078_v42 = vld [vmem:[#allocation13 + $0x30] sm:$0xff]   ;;  %v2079_v43 = vld [vmem:[#allocation13 + $0x38] sm:$0xff]   ;;  %v2080_v44 = vld [vmem:[#allocation16] sm:$0xff]  }
 0x174   :  { %v2081_v45 = vld [vmem:[#allocation16 + $0x8] sm:$0xff]   ;;  %v2082_v46 = vld [vmem:[#allocation16 + $0x10] sm:$0xff]   ;;  %v2083_v47 = vld [vmem:[#allocation16 + $0x18] sm:$0xff]  }
 0x175   :  { %1864 = vmatpush3.bf16.msra.mxu1 %v2058_v6  ;;  %v2084_v48 = vld [vmem:[#allocation16 + $0x20] sm:$0xff]   ;;  %v2085_v49 = vld [vmem:[#allocation16 + $0x28] sm:$0xff]   ;;  %v1707_v50 = vld [vmem:[#allocation12] ss:$0 sm:$0xff] }
 0x176   :  { %1865 = vmatprep.subr.bf16.mxu1 %v2557_v0  ;;  %1882 = vmatpush3.bf16.msra.mxu0 %v2065_v13  ;;  %v2086_v58 = vld [vmem:[#allocation16 + $0x30] sm:$0xff]   ;;  %v2087_v59 = vld [vmem:[#allocation16 + $0x38] sm:$0xff]   ;;  %v2088_v60 = vld [vmem:[#allocation19] sm:$0xff]  }
 0x177   :  { %1883 = vmatprep.subr.bf16.mxu0 %v2557_v0  ;;  %v2089_v61 = vld [vmem:[#allocation19 + $0x8] sm:$0xff]   ;;  %v2090_v62 = vld [vmem:[#allocation19 + $0x10] sm:$0xff]   ;;  %v2091_v63 = vld [vmem:[#allocation19 + $0x18] sm:$0xff]  }
 0x178   :  { %v2092_v1 = vld [vmem:[#allocation19 + $0x20] sm:$0xff]   ;;  %v2093_v2 = vld [vmem:[#allocation19 + $0x28] sm:$0xff]   ;;  %v1716_v4 = vld [vmem:[#allocation15] ss:$0 sm:$0xff] }
 0x179   :  { %1866 = vmatpush3.bf16.msra.mxu1 %v2059_v7  ;;  %v2094_v12 = vld [vmem:[#allocation19 + $0x30] sm:$0xff]   ;;  %v2095_v13 = vld [vmem:[#allocation19 + $0x38] sm:$0xff]  }
 0x17a   :  { %1867 = vmatprep.subr.bf16.mxu1 %v2557_v0  ;;  %1884 = vmatpush3.bf16.msra.mxu0 %v2066_v14  ;;  %v919_v14 = vld [vmem:[#allocation22] sm:$0xff] }
 0x17b   :  { %1885 = vmatprep.subr.bf16.mxu0 %v2557_v0 }
 0x17d   :  { %1868 = vmatpush3.bf16.msra.mxu1 %v2060_v8 }
 0x17e   :  { %1869 = vmatprep.subr.bf16.mxu1 %v2557_v0  ;;  %1886 = vmatpush3.bf16.msra.mxu0 %v2067_v15  ;;  %v927_v15 = vld [vmem:[#allocation22 + $0x40] sm:$0xff] }
 0x17f   :  { %1887 = vmatprep.subr.bf16.mxu0 %v2557_v0 }
 0x181   :  { %1870 = vmatpush3.bf16.msra.mxu1 %v2061_v9 }
 0x182   :  { %1871 = vmatprep.subr.bf16.mxu1 %v2557_v0  ;;  %1888 = vmatpush3.bf16.msra.mxu0 %v2068_v16  ;;  %v920_v16 = vld [vmem:[#allocation22 + $0x8] sm:$0xff] }
 0x183   :  { %1889 = vmatprep.subr.bf16.mxu0 %v2557_v0 }
 0x185   :  { %1872 = vmatpush3.bf16.msra.mxu1 %v2062_v10 }
 0x186   :  { %1873 = vmatprep.subr.bf16.mxu1 %v2557_v0  ;;  %1890 = vmatpush3.bf16.msra.mxu0 %v2069_v17  ;;  %v1744_v17 = vcombine.low %v919_v14, %v927_v15 }
 0x187   :  { %1891 = vmatprep.subr.bf16.mxu0 %v2557_v0 }
 0x189   :  { %1874 = vmatpush3.bf16.msra.mxu1 %v2063_v11 }
 0x18a   :  { %1899 = vmatprep.subr.bf16.mxu1 %v2557_v0  ;;  %1892 = vmatpush3.bf16.msra.mxu0 %v2070_v26 }
 0x18b   :  { %1893 = vmatprep.subr.bf16.mxu0 %v2557_v0 }
 0x18e   :  { %1894 = vmatpush3.bf16.msra.mxu0 %v2071_v27 }
 0x18f   :  { %1919 = vmatprep.subr.bf16.mxu0 %v2557_v0 }
 0x243   :  { %v342_v19 = vpop.f32.mrb[0].mxu0 }
 0x244   :  { %v343_v20 = vadd.f32 %v1695_v18, %v342_v19  ;;  %v1857_v21 = vpop.f32.mrb[1].mxu0  ;;  %v1745_v18 = vcombine.high %v919_v14, %v927_v15  ;;  %v2559_v19 = vmov 0   ;;  %v2563_v14 = vmov 4  }
 0x245   :  { %v345_v22 = vpop.f32.mrb[2].mxu0  ;;  %2038 = vset.pattern.permute.xlu0 %v2559_v19  ;;  %v2564_v15 = vmov 5  }
 0x246   :  { %v348_v23 = vmax.f32 %v343_v20, 0.0  ;;  %v1858_v24 = vpop.f32.mrb[3].mxu0  ;;  %v928_v20 = vld [vmem:[#allocation22 + $0x48] sm:$0xff]  ;;  %v921_v22 = vld [vmem:[#allocation22 + $0x10] sm:$0xff] }
 0x247   :  { %v1747_v21 = vcombine.high %v920_v16, %v928_v20  ;;  %v923_v24 = vld [vmem:[#allocation22 + $0x20] sm:$0xff]  ;;  %v1746_v26 = vcombine.low %v920_v16, %v928_v20  ;;  %v2566_v20 = vmov 8  }
 0x248   :  { %v349_v25 = vpack.c.bf16 %v348_v23, %v348_v23  ;;  %v929_v23 = vld [vmem:[#allocation22 + $0x50] sm:$0xff] }
 0x24a   :  { %1876 = vmatmul.mubr.bf16.vlgmr.msra.gmra.mrb[0].mxu1 %v349_v25  ;;  %v931_v25 = vld [vmem:[#allocation22 + $0x60] sm:$0xff] }
 0x24b   :  { %1915 = vmatprep.mubr.msk.bf16.mxu1 %vm2558_vm0, %v2557_v0  ;;  %1900 = vmatpush3.bf16.msra.mxu1 %v2072_v28  ;;  %v1752_v27 = vcombine.low %v923_v24, %v931_v25  ;;  %v1753_v28 = vcombine.high %v923_v24, %v931_v25 }
 0x24c   :  { %1901 = vmatprep.subr.bf16.mxu1 %v2557_v0 }
 0x24f   :  { %1902 = vmatpush3.bf16.msra.mxu1 %v2073_v29  ;;  %v1749_v29 = vcombine.high %v921_v22, %v929_v23 }
 0x250   :  { %1903 = vmatprep.subr.bf16.mxu1 %v2557_v0 }
 0x253   :  { %1904 = vmatpush3.bf16.msra.mxu1 %v2074_v30  ;;  %v922_v30 = vld [vmem:[#allocation22 + $0x18] sm:$0xff] }
 0x254   :  { %1905 = vmatprep.subr.bf16.mxu1 %v2557_v0 }
 0x257   :  { %1906 = vmatpush3.bf16.msra.mxu1 %v2075_v31  ;;  %v930_v31 = vld [vmem:[#allocation22 + $0x58] sm:$0xff] }
 0x258   :  { %1907 = vmatprep.subr.bf16.mxu1 %v2557_v0 }
 0x25b   :  { %1908 = vmatpush3.bf16.msra.mxu1 %v2076_v32  ;;  %v1748_v32 = vcombine.low %v921_v22, %v929_v23 }
 0x25c   :  { %1909 = vmatprep.subr.bf16.mxu1 %v2557_v0 }
 0x25f   :  { %1910 = vmatpush3.bf16.msra.mxu1 %v2077_v33  ;;  %v1751_v33 = vcombine.high %v922_v30, %v930_v31 }
 0x260   :  { %1911 = vmatprep.subr.bf16.mxu1 %v2557_v0 }
 0x263   :  { %1912 = vmatpush3.bf16.msra.mxu1 %v2078_v42 }
 0x264   :  { %1913 = vmatprep.subr.bf16.mxu1 %v2557_v0 }
 0x267   :  { %1914 = vmatpush3.bf16.msra.mxu1 %v2079_v43  ;;  %v1725_v43 = vld [vmem:[#allocation18] ss:$0 sm:$0xff] }
 0x268   :  { %1939 = vmatprep.subr.bf16.mxu1 %v2557_v0 }
 0x31d   :  { %v455_v35 = vpop.f32.mrb[0].mxu1 }
 0x31e   :  { %v456_v36 = vadd.f32 %v1698_v34, %v455_v35  ;;  %v1877_v37 = vpop.f32.mrb[1].mxu1  ;;  %v924_v34 = vld [vmem:[#allocation22 + $0x28] sm:$0xff] }
 0x31f   :  { %v458_v38 = vpop.f32.mrb[2].mxu1  ;;  %v932_v35 = vld [vmem:[#allocation22 + $0x68] sm:$0xff] }
 0x320   :  { %v461_v39 = vmax.f32 %v456_v36, 0.0  ;;  %v1878_v40 = vpop.f32.mrb[3].mxu1  ;;  %v1750_v36 = vcombine.low %v922_v30, %v930_v31  ;;  %v1755_v37 = vcombine.high %v924_v34, %v932_v35  ;;  %v926_v38 = vld [vmem:[#allocation22 + $0x38] sm:$0xff] }
 0x321   :  { %v1754_v40 = vcombine.low %v924_v34, %v932_v35 }
 0x322   :  { %v462_v41 = vpack.c.bf16 %v461_v39, %v461_v39  ;;  %v934_v39 = vld [vmem:[#allocation22 + $0x78] sm:$0xff] }
 0x323   :  { %v1758_v42 = vcombine.low %v926_v38, %v934_v39 }
 0x324   :  { %1896 = vmatmul.mubr.bf16.vlgmr.msra.gmra.mrb[4].mxu0 %v462_v41  ;;  %v1759_v41 = vcombine.high %v926_v38, %v934_v39  ;;  %v2571_v39 = vmov 10  }
 0x325   :  { %1935 = vmatprep.mubr.msk.bf16.mxu0 %vm2558_vm0, %v2557_v0  ;;  %1920 = vmatpush3.bf16.msra.mxu0 %v2080_v44 }
 0x326   :  { %1921 = vmatprep.subr.bf16.mxu0 %v2557_v0 }
 0x329   :  { %1922 = vmatpush3.bf16.msra.mxu0 %v2081_v45 }
 0x32a   :  { %1923 = vmatprep.subr.bf16.mxu0 %v2557_v0 }
 0x32d   :  { %1924 = vmatpush3.bf16.msra.mxu0 %v2082_v46 }
 0x32e   :  { %1925 = vmatprep.subr.bf16.mxu0 %v2557_v0 }
 0x331   :  { %1926 = vmatpush3.bf16.msra.mxu0 %v2083_v47 }
 0x332   :  { %1927 = vmatprep.subr.bf16.mxu0 %v2557_v0 }
 0x335   :  { %1928 = vmatpush3.bf16.msra.mxu0 %v2084_v48  ;;  %v925_v48 = vld [vmem:[#allocation22 + $0x30] sm:$0xff] }
 0x336   :  { %1929 = vmatprep.subr.bf16.mxu0 %v2557_v0 }
 0x339   :  { %1930 = vmatpush3.bf16.msra.mxu0 %v2085_v49  ;;  %v933_v49 = vld [vmem:[#allocation22 + $0x70] sm:$0xff] }
 0x33a   :  { %1931 = vmatprep.subr.bf16.mxu0 %v2557_v0 }
 0x33d   :  { %1932 = vmatpush3.bf16.msra.mxu0 %v2086_v58 }
 0x33e   :  { %1933 = vmatprep.subr.bf16.mxu0 %v2557_v0 }
 0x341   :  { %1934 = vmatpush3.bf16.msra.mxu0 %v2087_v59 }
 0x342   :  { %1015 = vmatprep.subr.bf16.mxu0 %v1745_v18 }
 0x3f7   :  { %v568_v51 = vpop.f32.mrb[4].mxu0 }
 0x3f8   :  { %v569_v52 = vadd.f32 %v1707_v50, %v568_v51  ;;  %v1897_v53 = vpop.f32.mrb[5].mxu0 }
 0x3f9   :  { %v571_v54 = vpop.f32.mrb[6].mxu0  ;;  %v1757_v53 = vcombine.high %v925_v48, %v933_v49 }
 0x3fa   :  { %v574_v55 = vmax.f32 %v569_v52, 0.0  ;;  %v1898_v56 = vpop.f32.mrb[7].mxu0  ;;  %v1756_v54 = vcombine.low %v925_v48, %v933_v49 }
 0x3fc   :  { %v575_v57 = vpack.c.bf16 %v574_v55, %v574_v55  ;;  %1679 = vst [vmem:[%s3161_s8 + $0x8] sm:$0xff] %v574_v55  ;;  %v2560_v55 = vmov 2  }
 0x3fd   :  { %2040 = vset.pattern.permute.xlu1 %v2560_v55  ;;  %v2102_v55 = vld [vmem:[%s3162_s25 + $0x30] sm:$0xff]  }
 0x3fe   :  { %1916 = vmatmul.mubr.bf16.vlgmr.msra.gmra.mrb[4].mxu1 %v575_v57 }
 0x3ff   :  { %1955 = vmatprep.mubr.msk.bf16.mxu1 %vm2558_vm0, %v2557_v0  ;;  %1940 = vmatpush3.bf16.msra.mxu1 %v2088_v60  ;;  %v1734_v60 = vld [vmem:[#allocation21] ss:$0 sm:$0xff] }
 0x400   :  { %1941 = vmatprep.subr.bf16.mxu1 %v2557_v0 }
 0x403   :  { %1942 = vmatpush3.bf16.msra.mxu1 %v2089_v61 }
 0x404   :  { %1943 = vmatprep.subr.bf16.mxu1 %v2557_v0 }
 0x407   :  { %1944 = vmatpush3.bf16.msra.mxu1 %v2090_v62 }
 0x408   :  { %1945 = vmatprep.subr.bf16.mxu1 %v2557_v0 }
 0x40b   :  { %1946 = vmatpush3.bf16.msra.mxu1 %v2091_v63 }
 0x40c   :  { %1947 = vmatprep.subr.bf16.mxu1 %v2557_v0 }
 0x40f   :  { %1948 = vmatpush3.bf16.msra.mxu1 %v2092_v1 }
 0x410   :  { %1949 = vmatprep.subr.bf16.mxu1 %v2557_v0 }
 0x413   :  { %1950 = vmatpush3.bf16.msra.mxu1 %v2093_v2 }
 0x414   :  { %1951 = vmatprep.subr.bf16.mxu1 %v2557_v0 }
 0x417   :  { %1952 = vmatpush3.bf16.msra.mxu1 %v2094_v12 }
 0x418   :  { %1953 = vmatprep.subr.bf16.mxu1 %v2557_v0 }
 0x41b   :  { %1954 = vmatpush3.bf16.msra.mxu1 %v2095_v13 }
 0x41c   :  { %1179 = vmatprep.subr.bf16.mxu1 %v1753_v28  ;;  %v2568_v28 = vmov 11  }
 0x4d1   :  { %v681_v5 = vpop.f32.mrb[4].mxu1 }
 0x4d2   :  { %v682_v6 = vadd.f32 %v1716_v4, %v681_v5  ;;  %v1917_v7 = vpop.f32.mrb[5].mxu1 }
 0x4d3   :  { %v684_v8 = vpop.f32.mrb[6].mxu1 }
 0x4d4   :  { %v687_v9 = vmax.f32 %v682_v6, 0.0  ;;  %v1918_v10 = vpop.f32.mrb[7].mxu1  ;;  %v2561_v8 = vmov 3  }
 0x4d6   :  { %v688_v11 = vpack.c.bf16 %v687_v9, %v687_v9  ;;  %v2562_v9 = vmov 1  }
 0x4d8   :  { %1936 = vmatmul.mubr.bf16.vlgmr.msra.gmra.mrb[8].mxu0 %v688_v11 }
 0x4d9   :  { %1047 = vmatprep.mubr.bf16.mxu0 %v2559_v19  ;;  %1016 = vmatpush1.bf16.msra.mxu0 %v1744_v17 }
 0x4da   :  { %1056 = vmatprep.subr.bf16.mxu0 %v1747_v21 }
 0x4e0   :  { %1760 = vmatmul.mubr.msk.bf16.vlgmr.msra.gmra.mrb[12].mxu0 %vm304_vm1, %v2926_v3 }
 0x4e1   :  { %1057 = vmatpush1.bf16.msra.mxu0 %v1746_v26  ;;  %1088 = vmatprep.mubr.bf16.mxu0 %v2559_v19 }
 0x4e2   :  { %1097 = vmatprep.subr.bf16.mxu0 %v1749_v29 }
 0x4e8   :  { %1761 = vmatmul.mubr.msk.bf16.vlgmr.msra.gmra.mrb[16].mxu0 %vm304_vm1, %v2926_v3 }
 0x4e9   :  { %1098 = vmatpush1.bf16.msra.mxu0 %v1748_v32  ;;  %1129 = vmatprep.mubr.bf16.mxu0 %v2559_v19  ;;  %v2569_v32 = vmov 9  }
 0x4ea   :  { %1138 = vmatprep.subr.bf16.mxu0 %v1751_v33  ;;  %v2570_v33 = vmov 14  }
 0x4f0   :  { %1762 = vmatmul.mubr.msk.bf16.vlgmr.msra.gmra.mrb[20].mxu0 %vm304_vm1, %v2926_v3 }
 0x4f1   :  { %1139 = vmatpush1.bf16.msra.mxu0 %v1750_v36  ;;  %1170 = vmatprep.mubr.bf16.mxu0 %v2559_v19 }
 0x4f2   :  { %1220 = vmatprep.subr.bf16.mxu0 %v1755_v37  ;;  %v2096_v37 = vld [vmem:[%s3162_s25] sm:$0xff]  }
 0x4f8   :  { %1763 = vmatmul.mubr.msk.bf16.vlgmr.msra.gmra.mrb[24].mxu0 %vm304_vm1, %v2926_v3 }
 0x4f9   :  { %1221 = vmatpush1.bf16.msra.mxu0 %v1754_v40  ;;  %1252 = vmatprep.mubr.bf16.mxu0 %v2559_v19  ;;  %v2097_v40 = vld [vmem:[%s3162_s25 + $0x8] sm:$0xff]  }
 0x4fa   :  { %1302 = vmatprep.subr.bf16.mxu0 %v1759_v41  ;;  %v2572_v41 = vmov 15  }
 0x500   :  { %1765 = vmatmul.mubr.msk.bf16.vlgmr.msra.gmra.mrb[28].mxu0 %vm304_vm1, %v2926_v3 }
 0x501   :  { %1303 = vmatpush1.bf16.msra.mxu0 %v1758_v42  ;;  %1334 = vmatprep.mubr.bf16.mxu0 %v2559_v19  ;;  %v2573_v42 = vmov 12  }
 0x502   :  { %1979 = vmatprep.subr.bf16.mxu0 %v2557_v0 }
 0x508   :  { %1767 = vmatmul.mubr.msk.bf16.vlgmr.msra.gmra.mrb[32].mxu0 %vm304_vm1, %v2926_v3 }
 0x509   :  { %1995 = vmatprep.mubr.msk.bf16.mxu0 %vm2558_vm0, %v2557_v0 }
 0x5ab   :  { %v794_v44 = vpop.f32.mrb[8].mxu0 }
 0x5ac   :  { %v795_v45 = vadd.f32 %v1725_v43, %v794_v44  ;;  %v1937_v46 = vpop.f32.mrb[9].mxu0  ;;  %v2098_v44 = vld [vmem:[%s3162_s25 + $0x10] sm:$0xff]  }
 0x5ad   :  { %v797_v47 = vpop.f32.mrb[10].mxu0  ;;  %v2574_v46 = vmov 13  }
 0x5ae   :  { %v800_v50 = vmax.f32 %v795_v45, 0.0  ;;  %v1938_v51 = vpop.f32.mrb[11].mxu0  ;;  %v2099_v45 = vld [vmem:[%s3162_s25 + $0x18] sm:$0xff]  }
 0x5b0   :  { %v801_v52 = vpack.c.bf16 %v800_v50, %v800_v50 }
 0x5b2   :  { %1956 = vmatmul.mubr.bf16.vlgmr.msra.gmra.mrb[8].mxu1 %v801_v52  ;;  %v2100_v52 = vld [vmem:[%s3162_s25 + $0x20] sm:$0xff]  }
 0x5b3   :  { %1180 = vmatpush1.bf16.msra.mxu1 %v1752_v27  ;;  %1211 = vmatprep.mubr.bf16.mxu1 %v2559_v19  ;;  %v3011_v56 = vpop.f32.mrb[12].mxu0  ;;  %v2567_v27 = vmov 7  }
 0x5b4   :  { %1261 = vmatprep.subr.bf16.mxu1 %v1757_v53  ;;  %v3013_v57 = vpop.f32.mrb[13].mxu0 }
 0x5b5   :  { %v1053_v58 = vpop.f32.mrb[14].mxu0 }
 0x5b6   :  { %v1054_v59 = vpop.f32.mrb[15].mxu0  ;;  %v2103_v58 = vld [vmem:[%s3162_s25 + $0x38] sm:$0xff]  }
 0x5b7   :  { %v2104_v59 = vld [vmem:[#allocation27] sm:$0xff]  }
 0x5b8   :  { %1980 = vmatpush3.bf16.msra.mxu0 %v2104_v59 }
 0x5b9   :  { %1981 = vmatprep.subr.bf16.mxu0 %v2557_v0 }
 0x5ba   :  { %1764 = vmatmul.mubr.msk.bf16.vlgmr.msra.gmra.mrb[12].mxu1 %vm304_vm1, %v2926_v3 }
 0x5bb   :  { %1262 = vmatpush1.bf16.msra.mxu1 %v1756_v54  ;;  %1293 = vmatprep.mubr.bf16.mxu1 %v2559_v19  ;;  %v3017_v7 = vpop.f32.mrb[16].mxu0  ;;  %v2565_v19 = vmov 6   ;;  %v2101_v54 = vld [vmem:[%s3162_s25 + $0x28] sm:$0xff]  }
 0x5bc   :  { %1959 = vmatprep.subr.bf16.mxu1 %v2557_v0  ;;  %v3025_v10 = vpop.f32.mrb[17].mxu0 }
 0x5bd   :  { %v1094_v11 = vpop.f32.mrb[18].mxu0 }
 0x5be   :  { %v1095_v12 = vpop.f32.mrb[19].mxu0 }
 0x5c2   :  { %1766 = vmatmul.mubr.msk.bf16.vlgmr.msra.gmra.mrb[16].mxu1 %vm304_vm1, %v2926_v3 }
 0x5c3   :  { %1975 = vmatprep.mubr.msk.bf16.mxu1 %vm2558_vm0, %v2557_v0  ;;  %v3029_v13 = vpop.f32.mrb[20].mxu0  ;;  %1960 = vmatpush3.bf16.msra.mxu1 %v2096_v37 }
 0x5c4   :  { %v3031_v16 = vpop.f32.mrb[21].mxu0  ;;  %1961 = vmatprep.subr.bf16.mxu1 %v2557_v0 }
 0x5c5   :  { %v1135_v17 = vpop.f32.mrb[22].mxu0 }
 0x5c6   :  { %v1136_v18 = vpop.f32.mrb[23].mxu0 }
 0x5c7   :  { %1962 = vmatpush3.bf16.msra.mxu1 %v2097_v40 }
 0x5c8   :  { %1963 = vmatprep.subr.bf16.mxu1 %v2557_v0 }
 0x5cb   :  { %v3035_v21 = vpop.f32.mrb[24].mxu0  ;;  %1964 = vmatpush3.bf16.msra.mxu1 %v2098_v44 }
 0x5cc   :  { %v3041_v23 = vpop.f32.mrb[25].mxu0  ;;  %1965 = vmatprep.subr.bf16.mxu1 %v2557_v0 }
 0x5cd   :  { %v1176_v24 = vpop.f32.mrb[26].mxu0 }
 0x5ce   :  { %v1177_v25 = vpop.f32.mrb[27].mxu0 }
 0x5cf   :  { %1966 = vmatpush3.bf16.msra.mxu1 %v2099_v45 }
 0x5d0   :  { %1967 = vmatprep.subr.bf16.mxu1 %v2557_v0 }
 0x5d3   :  { %v3043_v26 = vpop.f32.mrb[28].mxu0  ;;  %1968 = vmatpush3.bf16.msra.mxu1 %v2100_v52 }
 0x5d4   :  { %v3045_v29 = vpop.f32.mrb[29].mxu0  ;;  %1969 = vmatprep.subr.bf16.mxu1 %v2557_v0 }
 0x5d5   :  { %v1258_v30 = vpop.f32.mrb[30].mxu0 }
 0x5d6   :  { %v1259_v31 = vpop.f32.mrb[31].mxu0 }
 0x5d7   :  { %1970 = vmatpush3.bf16.msra.mxu1 %v2101_v54  ;;  %v2110_v54 = vld [vmem:[#allocation27 + $0x30] sm:$0xff]  }
 0x5d8   :  { %1971 = vmatprep.subr.bf16.mxu1 %v2557_v0 }
 0x5db   :  { %v3051_v35 = vpop.f32.mrb[32].mxu0  ;;  %1972 = vmatpush3.bf16.msra.mxu1 %v2102_v55 }
 0x5dc   :  { %v3077_v49 = vpop.f32.mrb[33].mxu0  ;;  %1973 = vmatprep.subr.bf16.mxu1 %v2557_v0 }
 0x5dd   :  { %v1340_v51 = vpop.f32.mrb[34].mxu0 }
 0x5de   :  { %v1341_v53 = vpop.f32.mrb[35].mxu0  ;;  %v1768_v51 = vld [vmem:[#allocation24] ss:$0 sm:$0xff] }
 0x5df   :  { %1974 = vmatpush3.bf16.msra.mxu1 %v2103_v58 }
 0x685   :  { %v907_v61 = vpop.f32.mrb[8].mxu1 }
 0x686   :  { %v908_v62 = vadd.f32 %v1734_v60, %v907_v61  ;;  %v1957_v63 = vpop.f32.mrb[9].mxu1  ;;  %v2105_v60 = vld [vmem:[#allocation27 + $0x8] sm:$0xff]   ;;  %v2106_v61 = vld [vmem:[#allocation27 + $0x10] sm:$0xff]  }
 0x687   :  { %v910_v1 = vpop.f32.mrb[10].mxu1  ;;  %1982 = vmatpush3.bf16.msra.mxu0 %v2105_v60  ;;  %v2108_v63 = vld [vmem:[#allocation27 + $0x20] sm:$0xff]  }
 0x688   :  { %v1743_v2 = vmul.f32 -1.442695, %v908_v62  ;;  %v1958_v4 = vpop.f32.mrb[11].mxu1  ;;  %1983 = vmatprep.subr.bf16.mxu0 %v2557_v0  ;;  %v2107_v62 = vld [vmem:[#allocation27 + $0x18] sm:$0xff]   ;;  %v2109_v1 = vld [vmem:[#allocation27 + $0x28] sm:$0xff]  }
 0x68a   :  { %2112 = vpow2.f32 %v1743_v2 }
 0x68b   :  { %1984 = vmatpush3.bf16.msra.mxu0 %v2106_v61 }
 0x68c   :  { %1985 = vmatprep.subr.bf16.mxu0 %v2557_v0 }
 0x68d   :  { %v3037_v22 = vpop.f32.mrb[12].mxu1 }
 0x68e   :  { %v3049_v34 = vpop.f32.mrb[13].mxu1 }
 0x68f   :  { %v1217_v36 = vpop.f32.mrb[14].mxu1  ;;  %1986 = vmatpush3.bf16.msra.mxu0 %v2107_v62  ;;  %v1778_v62 = vld [vmem:[#allocation28] ss:$0 sm:$0xff] }
 0x690   :  { %v1218_v38 = vpop.f32.mrb[15].mxu1  ;;  %1987 = vmatprep.subr.bf16.mxu0 %v2557_v0 }
 0x693   :  { %1988 = vmatpush3.bf16.msra.mxu0 %v2108_v63 }
 0x694   :  { %v2113_v3 = vpop.eup %2112  ;;  %1989 = vmatprep.subr.bf16.mxu0 %v2557_v0 }
 0x695   :  { %v916_v5 = vadd.f32 1.0, %v2113_v3  ;;  %v3064_v43 = vpop.f32.mrb[16].mxu1 }
 0x696   :  { %v3074_v47 = vpop.f32.mrb[17].mxu1 }
 0x697   :  { %2114 = vrcp.f32 %v916_v5  ;;  %v1299_v48 = vpop.f32.mrb[18].mxu1  ;;  %1990 = vmatpush3.bf16.msra.mxu0 %v2109_v1 }
 0x698   :  { %v1300_v50 = vpop.f32.mrb[19].mxu1  ;;  %1991 = vmatprep.subr.bf16.mxu0 %v2557_v0 }
 0x69b   :  { %1992 = vmatpush3.bf16.msra.mxu0 %v2110_v54 }
 0x69c   :  { %1993 = vmatprep.subr.bf16.mxu0 %v2557_v0 }
 0x6a1   :  { %v3015_v6 = vpop.eup %2114 }
 0x6a2   :  { %1678 = vst [vmem:[%s3161_s8] sm:$0xff] %v3015_v6  ;;  %1355 = vperm.xlu1 %2040, %v3015_v6   ;;  %1345 = vperm.xlu0 %2038, %v3015_v6  }
 0x6a6   :  { %2041 = vset.pattern.permute.xlu1 %v2561_v8  ;;  %2039 = vset.pattern.permute.xlu0 %v2562_v9 }
 0x6a7   :  { %1360 = vperm.xlu1 %2041, %v3015_v6   ;;  %1350 = vperm.xlu0 %2039, %v3015_v6  }
 0x6ab   :  { %2042 = vset.pattern.permute.xlu1 %v2563_v14  ;;  %2043 = vset.pattern.permute.xlu0 %v2564_v15 }
 0x6ac   :  { %1365 = vperm.xlu1 %2042, %v3015_v6   ;;  %1370 = vperm.xlu0 %2043, %v3015_v6  }
 0x6b0   :  { %2044 = vset.pattern.permute.xlu1 %v2565_v19  ;;  %2046 = vset.pattern.permute.xlu0 %v2566_v20 }
 0x6b1   :  { %1375 = vperm.xlu1 %2044, %v3015_v6   ;;  %1385 = vperm.xlu0 %2046, %v3015_v6  }
 0x6b5   :  { %2045 = vset.pattern.permute.xlu1 %v2567_v27  ;;  %2049 = vset.pattern.permute.xlu0 %v2568_v28 }
 0x6b6   :  { %1380 = vperm.xlu1 %2045, %v3015_v6   ;;  %1400 = vperm.xlu0 %2049, %v3015_v6  }
 0x6ba   :  { %2047 = vset.pattern.permute.xlu1 %v2569_v32  ;;  %2052 = vset.pattern.permute.xlu0 %v2570_v33 }
 0x6bb   :  { %1390 = vperm.xlu1 %2047, %v3015_v6   ;;  %1415 = vperm.xlu0 %2052, %v3015_v6  }
 0x6bf   :  { %2048 = vset.pattern.permute.xlu1 %v2571_v39  ;;  %2054 = vset.pattern.permute.xlu0 %v2572_v41 }
 0x6c0   :  { %1395 = vperm.xlu1 %2048, %v3015_v6  }
 0x6c4   :  { %2050 = vset.pattern.permute.xlu1 %v2573_v42 }
 0x6c5   :  { %1405 = vperm.xlu1 %2050, %v3015_v6  }
 0x6c9   :  { %2051 = vset.pattern.permute.xlu1 %v2574_v46 }
 0x6ca   :  { %1410 = vperm.xlu1 %2051, %v3015_v6  }
 0x6ce   :  { %2053 = vset.pattern.permute.xlu1 %v2572_v41 }
 0x6cf   :  { %1420 = vperm.xlu1 %2053, %v3015_v6  }
 0x721   :  { %v1356_v2 = vpop.permute.xlu1 %1355  ;;  %v1346_v4 = vpop.permute.xlu0 %1345 }
 0x722   :  { %v1348_v6 = vmul.f32 %v1346_v4, %v3011_v56  ;;  %v1358_v8 = vmul.f32 %v1356_v2, %v3017_v7 }
 0x726   :  { %v1361_v3 = vpop.permute.xlu1 %1360  ;;  %v1351_v5 = vpop.permute.xlu0 %1350 }
 0x727   :  { %v1353_v9 = vmul.f32 %v1351_v5, %v3013_v57  ;;  %v1363_v11 = vmul.f32 %v1361_v3, %v3025_v10 }
 0x729   :  { %v1424_v12 = vadd.f32 %v1353_v9, %v1348_v6  ;;  %v1425_v14 = vadd.f32 %v1363_v11, %v1358_v8 }
 0x72b   :  { %v1432_v15 = vadd.f32 %v1425_v14, %v1424_v12  ;;  %v1366_v17 = vpop.permute.xlu1 %1365  ;;  %v1371_v18 = vpop.permute.xlu0 %1370 }
 0x72c   :  { %v1368_v19 = vmul.f32 %v1366_v17, %v3029_v13  ;;  %v1373_v20 = vmul.f32 %v1371_v18, %v3031_v16 }
 0x72e   :  { %v1426_v24 = vadd.f32 %v1373_v20, %v1368_v19 }
 0x730   :  { %v1376_v25 = vpop.permute.xlu1 %1375  ;;  %v1386_v28 = vpop.permute.xlu0 %1385 }
 0x731   :  { %v1378_v56 = vmul.f32 %v1376_v25, %v3035_v21  ;;  %v1388_v31 = vmul.f32 %v1386_v28, %v3037_v22 }
 0x735   :  { %v1381_v27 = vpop.permute.xlu1 %1380  ;;  %v1401_v36 = vpop.permute.xlu0 %1400 }
 0x736   :  { %v1383_v7 = vmul.f32 %v1381_v27, %v3041_v23  ;;  %v1403_v16 = vmul.f32 %v1401_v36, %v3045_v29 }
 0x738   :  { %v1427_v57 = vadd.f32 %v1383_v7, %v1378_v56 }
 0x73a   :  { %v1433_v30 = vadd.f32 %v1427_v57, %v1426_v24  ;;  %v1391_v10 = vpop.permute.xlu1 %1390  ;;  %v1416_v44 = vpop.permute.xlu0 %1415 }
 0x73b   :  { %v1393_v32 = vmul.f32 %v1391_v10, %v3049_v34  ;;  %v1418_v34 = vmul.f32 %v1416_v44, %v3051_v35 }
 0x73c   :  { %v1436_v33 = vadd.f32 %v1433_v30, %v1432_v15 }
 0x73d   :  { %v1428_v13 = vadd.f32 %v1393_v32, %v1388_v31 }
 0x73f   :  { %v1396_v37 = vpop.permute.xlu1 %1395 }
 0x740   :  { %v1398_v38 = vmul.f32 %v1396_v37, %v3043_v26 }
 0x742   :  { %v1429_v39 = vadd.f32 %v1403_v16, %v1398_v38 }
 0x744   :  { %v1434_v21 = vadd.f32 %v1429_v39, %v1428_v13  ;;  %v1406_v40 = vpop.permute.xlu1 %1405 }
 0x745   :  { %v1408_v41 = vmul.f32 %v1406_v40, %v3064_v43  ;;  %v2111_v43 = vld [vmem:[#allocation27 + $0x38] sm:$0xff]  }
 0x746   :  { %1994 = vmatpush3.bf16.msra.mxu0 %v2111_v43 }
 0x749   :  { %v1411_v23 = vpop.permute.xlu1 %1410 }
 0x74a   :  { %v1413_v42 = vmul.f32 %v1411_v23, %v3074_v47  ;;  %v1769_v47 = vld [vmem:[#allocation25] ss:$0 sm:$0xff] }
 0x74c   :  { %v1430_v22 = vadd.f32 %v1413_v42, %v1408_v41 }
 0x74e   :  { %v1421_v45 = vpop.permute.xlu1 %1420 }
 0x74f   :  { %v1423_v46 = vmul.f32 %v1421_v45, %v3077_v49 }
 0x751   :  { %v1431_v48 = vadd.f32 %v1423_v46, %v1418_v34 }
 0x753   :  { %v1435_v50 = vadd.f32 %v1431_v48, %v1430_v22 }
 0x755   :  { %v1437_v29 = vadd.f32 %v1435_v50, %v1434_v21 }
 0x757   :  { %v1438_v26 = vadd.f32 %v1437_v29, %v1436_v33 }
 0x759   :  { %v1446_v52 = vadd.f32 %v1768_v51, %v1438_v26 }
 0x75b   :  { %v1447_v53 = vpack.c.bf16 %v1446_v52, %v1446_v52 }
 0x75d   :  { %1976 = vmatmul.mubr.bf16.vlgmr.msra.gmra.mrb[20].mxu1 %v1447_v53 }
 0x830   :  { %v1553_v55 = vpop.f32.mrb[20].mxu1 }
 0x831   :  { %v1554_v58 = vadd.f32 %v1769_v47, %v1553_v55  ;;  %v1977_v35 = vpop.f32.mrb[21].mxu1 }
 0x832   :  { %v1556_v59 = vpop.f32.mrb[22].mxu1 }
 0x833   :  { %v1559_v49 = vmax.f32 %v1554_v58, 0.0  ;;  %v1978_v60 = vpop.f32.mrb[23].mxu1 }
 0x835   :  { %v1560_v61 = vpack.c.bf16 %v1559_v49, %v1559_v49 }
 0x837   :  { %1996 = vmatmul.mubr.bf16.vlgmr.msra.gmra.mrb[36].mxu0 %v1560_v61 }
 0x90a   :  { %v1666_v63 = vpop.f32.mrb[36].mxu0 }
 0x90b   :  { %v1667_v1 = vadd.f32 %v1778_v62, %v1666_v63  ;;  %v1997_v2 = vpop.f32.mrb[37].mxu0 }
 0x90c   :  { %v1669_v4 = vpop.f32.mrb[38].mxu0 }
 0x90d   :  { %v1787_v3 = vmul.f32 -1.442695, %v1667_v1  ;;  %v1998_v5 = vpop.f32.mrb[39].mxu0 }
 0x90f   :  { %2116 = vpow2.f32 %v1787_v3 }
 0x919   :  { %v2117_v0 = vpop.eup %2116 }
 0x91a   :  { %v1675_v6 = vadd.f32 1.0, %v2117_v0 }
 0x91c   :  { %2118 = vrcp.f32 %v1675_v6 }
 0x926   :  { %v2119_v8 = vpop.eup %2118 }
 0x927   :  { %1680 = vst [vmem:[%s3161_s8 + $0x10] sm:$0xff] %v2119_v8 }
 0x928   :  { %1685 = vsyncpa [#allocation3], 1 }
 0x929   :  { %1686 = vsyncpa [#allocation5], 1 }
 0x92a   :  { %1687 = vsyncpa [#allocation8], 1 }
 0x92b   :  { %1688 = vsyncpa [#allocation11], 1 }
 0x92c   :  { %1689 = vsyncpa [#allocation14], 1 }
 0x92d   :  { %1690 = vsyncpa [#allocation17], 1 }
 0x92e   :  { %1691 = vsyncpa [#allocation20], 1 }
 0x92f   :  { %1692 = vsyncpa [#allocation23], 1 }
 0x930   :  { %1693 = vsyncpa [#allocation26], 1 }
 0x931   :  { %1694 = vsyncpa [#allocation29], 1 }

</bundles_post_ra>
